<compile_context>
chip_gen: v5e
topology: v5e:2x2
jax: 0.10.0
libtpu: 0.0.40
codegen_flags: <defaults>
</compile_context>

<pallas_src>
import functools
import math

import jax
import jax.numpy as jnp
from jax import lax
from jax.experimental import pallas as pl
from jax.experimental.pallas import tpu as pltpu


# --------------------------------------------------------------------------- #
# In-kernel helpers                                                            #
# --------------------------------------------------------------------------- #
def _layernorm(x, gamma, beta, eps=1e-5):
    mu = jnp.mean(x, axis=-1, keepdims=True)
    xc = x - mu
    var = jnp.mean(xc * xc, axis=-1, keepdims=True)
    inv = lax.rsqrt(var + eps)
    return xc * inv * gamma + beta


# --------------------------------------------------------------------------- #
# Pallas kernel: fused stack of post-norm TransformerEncoderLayers             #
# grid = (num_layers,); activation resident in the y output block              #
# --------------------------------------------------------------------------- #
def _encoder_stack_kernel(x_ref, pos_ref, kpm_ref,
                          wqk_ref, bqk_ref, wv_ref, bv_ref,
                          wo_ref, bo_ref,
                          w1_ref, b1_ref, w2_ref, b2_ref,
                          g1_ref, bt1_ref, g2_ref, bt2_ref,
                          y_ref, aw_ref,
                          *, nhead, bs, seq, d_model):
    layer = pl.program_id(0)

    # Layer 0: seed the resident activation (y block, constant index map).
    @pl.when(layer == 0)
    def _():
        y_ref[...] = x_ref[...]

    S, D = seq, d_model
    BS = bs * S
    dh = D // nhead
    mm = jnp.bfloat16                       # matmul operand dtype

    act3 = y_ref[...]                       # (bs, S, D) f32 current activation
    pos3 = pos_ref[...]                     # (bs, S, D)
    kpm = kpm_ref[...]                      # (bs, 1, S)  1.0 => masked key
    mask_bias = kpm * jnp.float32(-1e30)    # hoisted out of the head loop

    act = act3.reshape(BS, D)
    qk_in = (act3 + pos3).reshape(BS, D).astype(mm)

    # ---- self-attention: merged Q/K projection, separate V projection ------- #
    qk = jnp.dot(qk_in, wqk_ref[0], preferred_element_type=jnp.float32) + bqk_ref[0]
    v = jnp.dot(act.astype(mm), wv_ref[0], preferred_element_type=jnp.float32) + bv_ref[0]
    v3 = v.reshape(bs, S, D).astype(mm)
    wo = wo_ref[0]                          # (D, D) bf16

    attn_out = jnp.zeros((BS, D), jnp.float32)
    aw_acc = jnp.zeros((bs, S, S), jnp.float32)
    for h in range(nhead):                  # static, small head count
        lo = h * dh
        qh = qk[:, lo:lo + dh].reshape(bs, S, dh).astype(mm)          # scale folded in W_q
        kh = qk[:, D + lo:D + lo + dh].reshape(bs, S, dh).astype(mm)
        vh = v3[:, :, lo:lo + dh]
        s = jnp.einsum('bqd,bkd->bqk', qh, kh,
                       preferred_element_type=jnp.float32)             # (bs, S, S) f32
        s = s + mask_bias
        s = s - jnp.max(s, axis=-1, keepdims=True)
        e = jnp.exp(s)
        p = e * pl.reciprocal(jnp.sum(e, axis=-1, keepdims=True), approx=True)
        aw_acc = aw_acc + p
        ctx = jnp.einsum('bqk,bkd->bqd', p.astype(mm), vh,
                         preferred_element_type=jnp.float32)            # (bs, S, dh)
        # fold head context straight into the out-projection (sublane slice of W_o)
        attn_out = attn_out + jnp.dot(ctx.reshape(BS, dh).astype(mm),
                                      wo[lo:lo + dh, :],
                                      preferred_element_type=jnp.float32)

    attn_out = attn_out + bo_ref[0]

    # ---- residual + norm1 ---------------------------------------------------- #
    h1 = _layernorm(act + attn_out, g1_ref[0], bt1_ref[0])

    # ---- FFN (linear1 -> relu -> linear2) + residual + norm2 ------------------ #
    ff = jnp.dot(h1.astype(mm), w1_ref[0], preferred_element_type=jnp.float32) + b1_ref[0]
    ff = jnp.maximum(ff, 0.0)
    ff = jnp.dot(ff.astype(mm), w2_ref[0], preferred_element_type=jnp.float32) + b2_ref[0]
    h2 = _layernorm(h1 + ff, g2_ref[0], bt2_ref[0])

    y_ref[...] = h2.reshape(bs, S, D)
    # aw block index map is constant over layers => HBM gets only the final
    # (last-layer) averaged attention weights, matching PyTorch semantics.
    aw_ref[...] = aw_acc * (1.0 / nhead)


# --------------------------------------------------------------------------- #
# Wrapper: one pallas_call per encoder stack                                   #
# --------------------------------------------------------------------------- #
def encoder_stack_pallas(x, pos, kpm, sp, nhead):
    """x, pos: (bs, S, D) f32.  kpm: (bs, 1, S) f32 (1.0 = masked key)."""
    bs, S, D = x.shape
    L = sp["wqk"].shape[0]
    dff = sp["w1"].shape[2]
    kernel = functools.partial(_encoder_stack_kernel,
                               nhead=nhead, bs=bs, seq=S, d_model=D)
    resident = lambda l: (0, 0, 0)      # same block every layer -> stays in VMEM
    per_layer = lambda l: (l, 0, 0)     # stream layer l's weights

    y, aw = pl.pallas_call(
        kernel,
        out_shape=(jax.ShapeDtypeStruct((bs, S, D), jnp.float32),
                   jax.ShapeDtypeStruct((bs, S, S), jnp.float32)),
        grid=(L,),
        in_specs=[
            pl.BlockSpec((bs, S, D), resident),        # x (encoder input)
            pl.BlockSpec((bs, S, D), resident),        # pos
            pl.BlockSpec((bs, 1, S), resident),        # key padding mask
            pl.BlockSpec((1, D, 2 * D), per_layer),    # W_qk (scale folded into Q)
            pl.BlockSpec((1, 1, 2 * D), per_layer),    # b_qk
            pl.BlockSpec((1, D, D), per_layer),        # W_v
            pl.BlockSpec((1, 1, D), per_layer),        # b_v
            pl.BlockSpec((1, D, D), per_layer),        # W_o
            pl.BlockSpec((1, 1, D), per_layer),        # b_o
            pl.BlockSpec((1, D, dff), per_layer),      # W_1
            pl.BlockSpec((1, 1, dff), per_layer),      # b_1
            pl.BlockSpec((1, dff, D), per_layer),      # W_2
            pl.BlockSpec((1, 1, D), per_layer),        # b_2
            pl.BlockSpec((1, 1, D), per_layer),        # norm1 gamma
            pl.BlockSpec((1, 1, D), per_layer),        # norm1 beta
            pl.BlockSpec((1, 1, D), per_layer),        # norm2 gamma
            pl.BlockSpec((1, 1, D), per_layer),        # norm2 beta
        ],
        out_specs=(pl.BlockSpec((bs, S, D), resident),
                   pl.BlockSpec((bs, S, S), resident)),
        compiler_params=pltpu.CompilerParams(
            dimension_semantics=("arbitrary",),
            vmem_limit_bytes=32 * 1024 * 1024),
    )(x, pos, kpm,
      sp["wqk"], sp["bqk"], sp["wv"], sp["bv"], sp["wo"], sp["bo"],
      sp["w1"], sp["b1"], sp["w2"], sp["b2"],
      sp["g1"], sp["beta1"], sp["g2"], sp["beta2"])
    return y, aw


# --------------------------------------------------------------------------- #
# Allentransformer_oframe.forward                                              #
# --------------------------------------------------------------------------- #
def allentransformer_oframe_forward(src, mask, pos_embed, row_params, col_params, nhead):
    bs, c, h, w = src.shape

    # Row encoder over the h axis; batch-major sequences (bs, h, c*w).
    row_src = jnp.transpose(src, (0, 2, 1, 3)).reshape(bs, h, c * w)
    row_pos = jnp.transpose(pos_embed, (0, 2, 1, 3)).reshape(bs, h, c * w)
    row_kpm = jnp.all(mask, axis=-1).reshape(bs, h).astype(jnp.float32)[:, None, :]

    # Col encoder over the w axis; batch-major sequences (bs, w, c*h).
    col_src = jnp.transpose(src, (0, 3, 1, 2)).reshape(bs, w, c * h)
    col_pos = jnp.transpose(pos_embed, (0, 3, 1, 2)).reshape(bs, w, c * h)
    col_kpm = (mask.astype(jnp.int32).sum(axis=-2) == mask.shape[-2]
               ).reshape(bs, w).astype(jnp.float32)[:, None, :]

    row_y, row_weights = encoder_stack_pallas(row_src, row_pos, row_kpm, row_params, nhead)
    col_y, col_weights = encoder_stack_pallas(col_src, col_pos, col_kpm, col_params, nhead)

    row_memory = jnp.transpose(row_y.reshape(bs, h, c, w), (0, 2, 1, 3))
    col_memory = jnp.transpose(col_y.reshape(bs, w, c, h), (0, 2, 3, 1))
    return col_memory + row_memory, row_weights, col_weights


# --------------------------------------------------------------------------- #
# Deterministic parameter init (xavier_uniform for dim>1, zeros/ones otherwise)#
# --------------------------------------------------------------------------- #
def init_layer_params(key, d_model, d_ff):
    ks = jax.random.split(key, 4)

    def xavier(k, shape):                       # torch weight shape (out, in)
        fan_out, fan_in = shape
        limit = math.sqrt(6.0 / (fan_in + fan_out))
        return jax.random.uniform(k, shape, jnp.float32, -limit, limit)

    return dict(
        in_w=xavier(ks[0], (3 * d_model, d_model)),
        in_b=jnp.zeros((3 * d_model,), jnp.float32),
        out_w=xavier(ks[1], (d_model, d_model)),
        out_b=jnp.zeros((d_model,), jnp.float32),
        w1=xavier(ks[2], (d_ff, d_model)), b1=jnp.zeros((d_ff,), jnp.float32),
        w2=xavier(ks[3], (d_model, d_ff)), b2=jnp.zeros((d_model,), jnp.float32),
        g1=jnp.ones((d_model,), jnp.float32), beta1=jnp.zeros((d_model,), jnp.float32),
        g2=jnp.ones((d_model,), jnp.float32), beta2=jnp.zeros((d_model,), jnp.float32),
    )


def stack_encoder_params(layer_params, d_model, nhead, matmul_dtype=jnp.bfloat16):
    """Stack per-layer params with a leading L axis; transpose weights for x@W,
    merge Q/K, fold the 1/sqrt(dh) attention scale into the Q weights/bias and
    cast matmul weights to bf16 (biases / LayerNorm params stay f32)."""
    D = d_model
    dh = D // nhead
    scale = 1.0 / math.sqrt(dh)
    cols = {k: [] for k in ("wqk", "bqk", "wv", "bv", "wo", "bo",
                            "w1", "b1", "w2", "b2", "g1", "beta1", "g2", "beta2")}
    for p in layer_params:
        wq_t = p["in_w"][0:D, :].T * scale
        wk_t = p["in_w"][D:2 * D, :].T
        wv_t = p["in_w"][2 * D:3 * D, :].T
        bq = p["in_b"][0:D] * scale
        bk = p["in_b"][D:2 * D]
        bvv = p["in_b"][2 * D:3 * D]
        cols["wqk"].append(jnp.concatenate([wq_t, wk_t], axis=1).astype(matmul_dtype))
        cols["bqk"].append(jnp.concatenate([bq, bk])[None, :])
        cols["wv"].append(wv_t.astype(matmul_dtype))
        cols["bv"].append(bvv[None, :])
        cols["wo"].append(p["out_w"].T.astype(matmul_dtype))
        cols["bo"].append(p["out_b"][None, :])
        cols["w1"].append(p["w1"].T.astype(matmul_dtype))
        cols["b1"].append(p["b1"][None, :])
        cols["w2"].append(p["w2"].T.astype(matmul_dtype))
        cols["b2"].append(p["b2"][None, :])
        cols["g1"].append(p["g1"][None, :])
        cols["beta1"].append(p["beta1"][None, :])
        cols["g2"].append(p["g2"][None, :])
        cols["beta2"].append(p["beta2"][None, :])
    return {k: jnp.stack(v, axis=0) for k, v in cols.items()}


if __name__ == "__main__":
    # small shapes consistent with the module's forward
    bs, c, h, w = 2, 4, 8, 8
    nhead = 4
    num_row_layer = num_col_layer = 2
    dim_feedforward = 64
    row_dim = c * w       # d_model of the row encoder
    col_dim = c * h       # d_model of the col encoder

    key = jax.random.PRNGKey(0)
    k_src, k_pos, k_rp, k_cp = jax.random.split(key, 4)

    src = jax.random.normal(k_src, (bs, c, h, w), jnp.float32)
    pos_embed = 0.1 * jax.random.normal(k_pos, (bs, c, h, w), jnp.float32)

    # boolean padding mask (bs, h, w): True = padded
    mask = jnp.zeros((bs, h, w), dtype=bool)
    mask = mask.at[0, h - 1, :].set(True)   # last row of batch 0 fully padded
    mask = mask.at[0, :, w - 1].set(True)   # last col of batch 0 fully padded

    row_params = stack_encoder_params(
        [init_layer_params(k, row_dim, dim_feedforward)
         for k in jax.random.split(k_rp, num_row_layer)], row_dim, nhead)
    col_params = stack_encoder_params(
        [init_layer_params(k, col_dim, dim_feedforward)
         for k in jax.random.split(k_cp, num_col_layer)], col_dim, nhead)

    fwd = jax.jit(functools.partial(allentransformer_oframe_forward, nhead=nhead))
    out, row_weights, col_weights = fwd(src, mask, pos_embed,
                                        row_params=row_params, col_params=col_params)
    jax.block_until_ready((out, row_weights, col_weights))

    assert out.shape == (bs, c, h, w)
    assert row_weights.shape == (bs, h, h)
    assert col_weights.shape == (bs, w, w)
    assert bool(jnp.all(jnp.isfinite(out)))
    assert bool(jnp.all(jnp.isfinite(row_weights)))
    assert bool(jnp.all(jnp.isfinite(col_weights)))

    print("KERNEL_OK")
</pallas_src>

<mosaic_0001>
module attributes {stable_mosaic.version = 11 : i64} {
  func.func @_encoder_stack_kernel(%arg0: i32, %arg1: memref<2x8x32xf32, #tpu.memory_space<vmem>>, %arg2: memref<2x8x32xf32, #tpu.memory_space<vmem>>, %arg3: memref<2x1x8xf32, #tpu.memory_space<vmem>>, %arg4: memref<1x32x64xbf16, #tpu.memory_space<vmem>>, %arg5: memref<1x1x64xf32, #tpu.memory_space<vmem>>, %arg6: memref<1x32x32xbf16, #tpu.memory_space<vmem>>, %arg7: memref<1x1x32xf32, #tpu.memory_space<vmem>>, %arg8: memref<1x32x32xbf16, #tpu.memory_space<vmem>>, %arg9: memref<1x1x32xf32, #tpu.memory_space<vmem>>, %arg10: memref<1x32x64xbf16, #tpu.memory_space<vmem>>, %arg11: memref<1x1x64xf32, #tpu.memory_space<vmem>>, %arg12: memref<1x64x32xbf16, #tpu.memory_space<vmem>>, %arg13: memref<1x1x32xf32, #tpu.memory_space<vmem>>, %arg14: memref<1x1x32xf32, #tpu.memory_space<vmem>>, %arg15: memref<1x1x32xf32, #tpu.memory_space<vmem>>, %arg16: memref<1x1x32xf32, #tpu.memory_space<vmem>>, %arg17: memref<1x1x32xf32, #tpu.memory_space<vmem>>, %arg18: memref<2x8x32xf32, #tpu.memory_space<vmem>>, %arg19: memref<2x8x8xf32, #tpu.memory_space<vmem>>) attributes {dimension_semantics = [#tpu.dimension_semantics<arbitrary>], iteration_bounds = array<i64: 2>, scalar_prefetch = 0 : i64, scratch_operands = 0 : i64, tpu.core_type = #tpu.core_type<tc>, window_params = [{pipeline_mode = #tpu.pipeline_mode<synchronous>, transform_indices = @transform_0, window_bounds = array<i64: 2, 8, 32>}, {pipeline_mode = #tpu.pipeline_mode<synchronous>, transform_indices = @transform_1, window_bounds = array<i64: 2, 8, 32>}, {pipeline_mode = #tpu.pipeline_mode<synchronous>, transform_indices = @transform_2, window_bounds = array<i64: 2, 1, 8>}, {transform_indices = @transform_3, window_bounds = array<i64: 1, 32, 64>}, {transform_indices = @transform_4, window_bounds = array<i64: 1, 1, 64>}, {transform_indices = @transform_5, window_bounds = array<i64: 1, 32, 32>}, {transform_indices = @transform_6, window_bounds = array<i64: 1, 1, 32>}, {transform_indices = @transform_7, window_bounds = array<i64: 1, 32, 32>}, {transform_indices = @transform_8, window_bounds = array<i64: 1, 1, 32>}, {transform_indices = @transform_9, window_bounds = array<i64: 1, 32, 64>}, {transform_indices = @transform_10, window_bounds = array<i64: 1, 1, 64>}, {transform_indices = @transform_11, window_bounds = array<i64: 1, 64, 32>}, {transform_indices = @transform_12, window_bounds = array<i64: 1, 1, 32>}, {transform_indices = @transform_13, window_bounds = array<i64: 1, 1, 32>}, {transform_indices = @transform_14, window_bounds = array<i64: 1, 1, 32>}, {transform_indices = @transform_15, window_bounds = array<i64: 1, 1, 32>}, {transform_indices = @transform_16, window_bounds = array<i64: 1, 1, 32>}, {pipeline_mode = #tpu.pipeline_mode<synchronous>, transform_indices = @transform_17, window_bounds = array<i64: 2, 8, 32>}, {pipeline_mode = #tpu.pipeline_mode<synchronous>, transform_indices = @transform_18, window_bounds = array<i64: 2, 8, 8>}]} {
    %c0_i32 = arith.constant 0 : i32
    %0 = arith.cmpi eq, %arg0, %c0_i32 : i32
    %1 = arith.extui %0 : i1 to i32
    %c0_i32_0 = arith.constant 0 : i32
    %2 = arith.cmpi ne, %1, %c0_i32_0 : i32
    scf.if %2 {
      %c0_95 = arith.constant 0 : index
      %c0_96 = arith.constant 0 : index
      %c0_97 = arith.constant 0 : index
      %222 = vector.load %arg1[%c0_95, %c0_96, %c0_97] : memref<2x8x32xf32, #tpu.memory_space<vmem>>, vector<2x8x32xf32>
      %c0_98 = arith.constant 0 : index
      %c0_99 = arith.constant 0 : index
      %c0_100 = arith.constant 0 : index
      %223 = vector.load %arg18[%c0_98, %c0_99, %c0_100] : memref<2x8x32xf32, #tpu.memory_space<vmem>>, vector<2x8x32xf32>
      tpu.vector_store %arg18[%c0_98, %c0_99, %c0_100], %222 {strides = array<i32>} : memref<2x8x32xf32, #tpu.memory_space<vmem>>, vector<2x8x32xf32>,
    } else {
    }
    %c0 = arith.constant 0 : index
    %c0_1 = arith.constant 0 : index
    %c0_2 = arith.constant 0 : index
    %3 = vector.load %arg18[%c0, %c0_1, %c0_2] : memref<2x8x32xf32, #tpu.memory_space<vmem>>, vector<2x8x32xf32>
    %c0_3 = arith.constant 0 : index
    %c0_4 = arith.constant 0 : index
    %c0_5 = arith.constant 0 : index
    %4 = vector.load %arg2[%c0_3, %c0_4, %c0_5] : memref<2x8x32xf32, #tpu.memory_space<vmem>>, vector<2x8x32xf32>
    %c0_6 = arith.constant 0 : index
    %c0_7 = arith.constant 0 : index
    %c0_8 = arith.constant 0 : index
    %5 = vector.load %arg3[%c0_6, %c0_7, %c0_8] : memref<2x1x8xf32, #tpu.memory_space<vmem>>, vector<2x1x8xf32>
    %cst = arith.constant -1.000000e+30 : f32
    %6 = vector.broadcast %cst : f32 to vector<2x1x8xf32>
    %7 = arith.mulf %5, %6 : vector<2x1x8xf32>
    %8 = vector.shape_cast %3 : vector<2x8x32xf32> to vector<16x32xf32>
    %9 = arith.addf %3, %4 : vector<2x8x32xf32>
    %10 = vector.shape_cast %9 : vector<2x8x32xf32> to vector<16x32xf32>
    %11 = arith.truncf %10 : vector<16x32xf32> to vector<16x32xbf16>
    %c0_9 = arith.constant 0 : index
    %c0_10 = arith.constant 0 : index
    %c0_11 = arith.constant 0 : index
    %12 = vector.load %arg4[%c0_9, %c0_10, %c0_11] : memref<1x32x64xbf16, #tpu.memory_space<vmem>>, vector<1x32x64xbf16>
    %13 = vector.shape_cast %12 : vector<1x32x64xbf16> to vector<32x64xbf16>
    %cst_12 = arith.constant dense<0.000000e+00> : vector<16x64xf32>
    %14 = tpu.matmul %11, %13, %cst_12 {dimension_numbers = #tpu.dot_dimension_numbers<[1], [0], [0], [1], [0, 0, 1, 1], [], []>} : vector<16x32xbf16>, vector<32x64xbf16>, vector<16x64xf32> -> vector<16x64xf32>
    %c0_13 = arith.constant 0 : index
    %c0_14 = arith.constant 0 : index
    %c0_15 = arith.constant 0 : index
    %15 = vector.load %arg5[%c0_13, %c0_14, %c0_15] : memref<1x1x64xf32, #tpu.memory_space<vmem>>, vector<1x1x64xf32>
    %16 = vector.shape_cast %15 : vector<1x1x64xf32> to vector<1x64xf32>
    %17 = vector.broadcast %16 : vector<1x64xf32> to vector<16x64xf32>
    %18 = arith.addf %14, %17 : vector<16x64xf32>
    %19 = arith.truncf %8 : vector<16x32xf32> to vector<16x32xbf16>
    %c0_16 = arith.constant 0 : index
    %c0_17 = arith.constant 0 : index
    %c0_18 = arith.constant 0 : index
    %20 = vector.load %arg6[%c0_16, %c0_17, %c0_18] : memref<1x32x32xbf16, #tpu.memory_space<vmem>>, vector<1x32x32xbf16>
    %21 = vector.shape_cast %20 : vector<1x32x32xbf16> to vector<32x32xbf16>
    %cst_19 = arith.constant dense<0.000000e+00> : vector<16x32xf32>
    %22 = tpu.matmul %19, %21, %cst_19 {dimension_numbers = #tpu.dot_dimension_numbers<[1], [0], [0], [1], [0, 0, 1, 1], [], []>} : vector<16x32xbf16>, vector<32x32xbf16>, vector<16x32xf32> -> vector<16x32xf32>
    %c0_20 = arith.constant 0 : index
    %c0_21 = arith.constant 0 : index
    %c0_22 = arith.constant 0 : index
    %23 = vector.load %arg7[%c0_20, %c0_21, %c0_22] : memref<1x1x32xf32, #tpu.memory_space<vmem>>, vector<1x1x32xf32>
    %24 = vector.shape_cast %23 : vector<1x1x32xf32> to vector<1x32xf32>
    %25 = vector.broadcast %24 : vector<1x32xf32> to vector<16x32xf32>
    %26 = arith.addf %22, %25 : vector<16x32xf32>
    %27 = vector.shape_cast %26 : vector<16x32xf32> to vector<2x8x32xf32>
    %28 = arith.truncf %27 : vector<2x8x32xf32> to vector<2x8x32xbf16>
    %c0_23 = arith.constant 0 : index
    %c0_24 = arith.constant 0 : index
    %c0_25 = arith.constant 0 : index
    %29 = vector.load %arg8[%c0_23, %c0_24, %c0_25] : memref<1x32x32xbf16, #tpu.memory_space<vmem>>, vector<1x32x32xbf16>
    %30 = vector.shape_cast %29 : vector<1x32x32xbf16> to vector<32x32xbf16>
    %cst_26 = arith.constant 0.000000e+00 : f32
    %31 = vector.broadcast %cst_26 : f32 to vector<16x32xf32>
    %cst_27 = arith.constant 0.000000e+00 : f32
    %32 = vector.broadcast %cst_27 : f32 to vector<2x8x8xf32>
    %33 = vector.extract_strided_slice %18 {offsets = [0, 0], sizes = [16, 8], strides = [1, 1]} : vector<16x64xf32> to vector<16x8xf32>
    %34 = vector.shape_cast %33 : vector<16x8xf32> to vector<2x8x8xf32>
    %35 = arith.truncf %34 : vector<2x8x8xf32> to vector<2x8x8xbf16>
    %36 = vector.extract_strided_slice %18 {offsets = [0, 32], sizes = [16, 8], strides = [1, 1]} : vector<16x64xf32> to vector<16x8xf32>
    %37 = vector.shape_cast %36 : vector<16x8xf32> to vector<2x8x8xf32>
    %38 = arith.truncf %37 : vector<2x8x8xf32> to vector<2x8x8xbf16>
    %39 = vector.extract_strided_slice %28 {offsets = [0, 0, 0], sizes = [2, 8, 8], strides = [1, 1, 1]} : vector<2x8x32xbf16> to vector<2x8x8xbf16>
    "tpu.trace_start"() <{level = 10 : i32, message = "bqd,bkd->bqk"}> : () -> ()
    %cst_28 = arith.constant dense<0.000000e+00> : vector<2x8x8xf32>
    %40 = tpu.matmul %35, %38, %cst_28 {dimension_numbers = #tpu.dot_dimension_numbers<[2], [2], [1], [1], [0, 0, 0, 1, 1, 1], [0], [0]>} : vector<2x8x8xbf16>, vector<2x8x8xbf16>, vector<2x8x8xf32> -> vector<2x8x8xf32>
    "tpu.trace_stop"() : () -> ()
    %41 = vector.broadcast %7 : vector<2x1x8xf32> to vector<2x8x8xf32>
    %42 = arith.addf %40, %41 : vector<2x8x8xf32>
    %cst_29 = arith.constant dense<0xFF800000> : vector<2x8xf32>
    %43 = vector.multi_reduction <maximumf>, %42, %cst_29 [2] : vector<2x8x8xf32> to vector<2x8xf32>
    %44 = vector.shape_cast %43 : vector<2x8xf32> to vector<2x8x1xf32>
    %45 = vector.broadcast %44 : vector<2x8x1xf32> to vector<2x8x8xf32>
    %46 = arith.subf %42, %45 : vector<2x8x8xf32>
    %47 = math.exp %46 : vector<2x8x8xf32>
    %cst_30 = arith.constant dense<0.000000e+00> : vector<2x8xf32>
    %48 = vector.multi_reduction <add>, %47, %cst_30 [2] : vector<2x8x8xf32> to vector<2x8xf32>
    %49 = vector.shape_cast %48 : vector<2x8xf32> to vector<2x8x1xf32>
    %50 = tpu.reciprocal %49 {approx = true} : vector<2x8x1xf32> -> vector<2x8x1xf32>
    %51 = vector.broadcast %50 : vector<2x8x1xf32> to vector<2x8x8xf32>
    %52 = arith.mulf %47, %51 : vector<2x8x8xf32>
    %53 = arith.addf %32, %52 : vector<2x8x8xf32>
    %54 = arith.truncf %52 : vector<2x8x8xf32> to vector<2x8x8xbf16>
    "tpu.trace_start"() <{level = 10 : i32, message = "bqk,bkd->bqd"}> : () -> ()
    %cst_31 = arith.constant dense<0.000000e+00> : vector<2x8x8xf32>
    %55 = tpu.matmul %54, %39, %cst_31 {dimension_numbers = #tpu.dot_dimension_numbers<[2], [1], [1], [2], [0, 0, 0, 1, 1, 2], [0], [0]>} : vector<2x8x8xbf16>, vector<2x8x8xbf16>, vector<2x8x8xf32> -> vector<2x8x8xf32>
    "tpu.trace_stop"() : () -> ()
    %56 = vector.shape_cast %55 : vector<2x8x8xf32> to vector<16x8xf32>
    %57 = arith.truncf %56 : vector<16x8xf32> to vector<16x8xbf16>
    %58 = vector.extract_strided_slice %30 {offsets = [0, 0], sizes = [8, 32], strides = [1, 1]} : vector<32x32xbf16> to vector<8x32xbf16>
    %cst_32 = arith.constant dense<0.000000e+00> : vector<16x32xf32>
    %59 = tpu.matmul %57, %58, %cst_32 {dimension_numbers = #tpu.dot_dimension_numbers<[1], [0], [0], [1], [0, 0, 1, 1], [], []>} : vector<16x8xbf16>, vector<8x32xbf16>, vector<16x32xf32> -> vector<16x32xf32>
    %60 = arith.addf %31, %59 : vector<16x32xf32>
    %61 = vector.extract_strided_slice %18 {offsets = [0, 8], sizes = [16, 8], strides = [1, 1]} : vector<16x64xf32> to vector<16x8xf32>
    %62 = vector.shape_cast %61 : vector<16x8xf32> to vector<2x8x8xf32>
    %63 = arith.truncf %62 : vector<2x8x8xf32> to vector<2x8x8xbf16>
    %64 = vector.extract_strided_slice %18 {offsets = [0, 40], sizes = [16, 8], strides = [1, 1]} : vector<16x64xf32> to vector<16x8xf32>
    %65 = vector.shape_cast %64 : vector<16x8xf32> to vector<2x8x8xf32>
    %66 = arith.truncf %65 : vector<2x8x8xf32> to vector<2x8x8xbf16>
    %67 = vector.extract_strided_slice %28 {offsets = [0, 0, 8], sizes = [2, 8, 8], strides = [1, 1, 1]} : vector<2x8x32xbf16> to vector<2x8x8xbf16>
    "tpu.trace_start"() <{level = 10 : i32, message = "bqd,bkd->bqk"}> : () -> ()
    %cst_33 = arith.constant dense<0.000000e+00> : vector<2x8x8xf32>
    %68 = tpu.matmul %63, %66, %cst_33 {dimension_numbers = #tpu.dot_dimension_numbers<[2], [2], [1], [1], [0, 0, 0, 1, 1, 1], [0], [0]>} : vector<2x8x8xbf16>, vector<2x8x8xbf16>, vector<2x8x8xf32> -> vector<2x8x8xf32>
    "tpu.trace_stop"() : () -> ()
    %69 = vector.broadcast %7 : vector<2x1x8xf32> to vector<2x8x8xf32>
    %70 = arith.addf %68, %69 : vector<2x8x8xf32>
    %cst_34 = arith.constant dense<0xFF800000> : vector<2x8xf32>
    %71 = vector.multi_reduction <maximumf>, %70, %cst_34 [2] : vector<2x8x8xf32> to vector<2x8xf32>
    %72 = vector.shape_cast %71 : vector<2x8xf32> to vector<2x8x1xf32>
    %73 = vector.broadcast %72 : vector<2x8x1xf32> to vector<2x8x8xf32>
    %74 = arith.subf %70, %73 : vector<2x8x8xf32>
    %75 = math.exp %74 : vector<2x8x8xf32>
    %cst_35 = arith.constant dense<0.000000e+00> : vector<2x8xf32>
    %76 = vector.multi_reduction <add>, %75, %cst_35 [2] : vector<2x8x8xf32> to vector<2x8xf32>
    %77 = vector.shape_cast %76 : vector<2x8xf32> to vector<2x8x1xf32>
    %78 = tpu.reciprocal %77 {approx = true} : vector<2x8x1xf32> -> vector<2x8x1xf32>
    %79 = vector.broadcast %78 : vector<2x8x1xf32> to vector<2x8x8xf32>
    %80 = arith.mulf %75, %79 : vector<2x8x8xf32>
    %81 = arith.addf %53, %80 : vector<2x8x8xf32>
    %82 = arith.truncf %80 : vector<2x8x8xf32> to vector<2x8x8xbf16>
    "tpu.trace_start"() <{level = 10 : i32, message = "bqk,bkd->bqd"}> : () -> ()
    %cst_36 = arith.constant dense<0.000000e+00> : vector<2x8x8xf32>
    %83 = tpu.matmul %82, %67, %cst_36 {dimension_numbers = #tpu.dot_dimension_numbers<[2], [1], [1], [2], [0, 0, 0, 1, 1, 2], [0], [0]>} : vector<2x8x8xbf16>, vector<2x8x8xbf16>, vector<2x8x8xf32> -> vector<2x8x8xf32>
    "tpu.trace_stop"() : () -> ()
    %84 = vector.shape_cast %83 : vector<2x8x8xf32> to vector<16x8xf32>
    %85 = arith.truncf %84 : vector<16x8xf32> to vector<16x8xbf16>
    %86 = vector.extract_strided_slice %30 {offsets = [8, 0], sizes = [8, 32], strides = [1, 1]} : vector<32x32xbf16> to vector<8x32xbf16>
    %cst_37 = arith.constant dense<0.000000e+00> : vector<16x32xf32>
    %87 = tpu.matmul %85, %86, %cst_37 {dimension_numbers = #tpu.dot_dimension_numbers<[1], [0], [0], [1], [0, 0, 1, 1], [], []>} : vector<16x8xbf16>, vector<8x32xbf16>, vector<16x32xf32> -> vector<16x32xf32>
    %88 = arith.addf %60, %87 : vector<16x32xf32>
    %89 = vector.extract_strided_slice %18 {offsets = [0, 16], sizes = [16, 8], strides = [1, 1]} : vector<16x64xf32> to vector<16x8xf32>
    %90 = vector.shape_cast %89 : vector<16x8xf32> to vector<2x8x8xf32>
    %91 = arith.truncf %90 : vector<2x8x8xf32> to vector<2x8x8xbf16>
    %92 = vector.extract_strided_slice %18 {offsets = [0, 48], sizes = [16, 8], strides = [1, 1]} : vector<16x64xf32> to vector<16x8xf32>
    %93 = vector.shape_cast %92 : vector<16x8xf32> to vector<2x8x8xf32>
    %94 = arith.truncf %93 : vector<2x8x8xf32> to vector<2x8x8xbf16>
    %95 = vector.extract_strided_slice %28 {offsets = [0, 0, 16], sizes = [2, 8, 8], strides = [1, 1, 1]} : vector<2x8x32xbf16> to vector<2x8x8xbf16>
    "tpu.trace_start"() <{level = 10 : i32, message = "bqd,bkd->bqk"}> : () -> ()
    %cst_38 = arith.constant dense<0.000000e+00> : vector<2x8x8xf32>
    %96 = tpu.matmul %91, %94, %cst_38 {dimension_numbers = #tpu.dot_dimension_numbers<[2], [2], [1], [1], [0, 0, 0, 1, 1, 1], [0], [0]>} : vector<2x8x8xbf16>, vector<2x8x8xbf16>, vector<2x8x8xf32> -> vector<2x8x8xf32>
    "tpu.trace_stop"() : () -> ()
    %97 = vector.broadcast %7 : vector<2x1x8xf32> to vector<2x8x8xf32>
    %98 = arith.addf %96, %97 : vector<2x8x8xf32>
    %cst_39 = arith.constant dense<0xFF800000> : vector<2x8xf32>
    %99 = vector.multi_reduction <maximumf>, %98, %cst_39 [2] : vector<2x8x8xf32> to vector<2x8xf32>
    %100 = vector.shape_cast %99 : vector<2x8xf32> to vector<2x8x1xf32>
    %101 = vector.broadcast %100 : vector<2x8x1xf32> to vector<2x8x8xf32>
    %102 = arith.subf %98, %101 : vector<2x8x8xf32>
    %103 = math.exp %102 : vector<2x8x8xf32>
    %cst_40 = arith.constant dense<0.000000e+00> : vector<2x8xf32>
    %104 = vector.multi_reduction <add>, %103, %cst_40 [2] : vector<2x8x8xf32> to vector<2x8xf32>
    %105 = vector.shape_cast %104 : vector<2x8xf32> to vector<2x8x1xf32>
    %106 = tpu.reciprocal %105 {approx = true} : vector<2x8x1xf32> -> vector<2x8x1xf32>
    %107 = vector.broadcast %106 : vector<2x8x1xf32> to vector<2x8x8xf32>
    %108 = arith.mulf %103, %107 : vector<2x8x8xf32>
    %109 = arith.addf %81, %108 : vector<2x8x8xf32>
    %110 = arith.truncf %108 : vector<2x8x8xf32> to vector<2x8x8xbf16>
    "tpu.trace_start"() <{level = 10 : i32, message = "bqk,bkd->bqd"}> : () -> ()
    %cst_41 = arith.constant dense<0.000000e+00> : vector<2x8x8xf32>
    %111 = tpu.matmul %110, %95, %cst_41 {dimension_numbers = #tpu.dot_dimension_numbers<[2], [1], [1], [2], [0, 0, 0, 1, 1, 2], [0], [0]>} : vector<2x8x8xbf16>, vector<2x8x8xbf16>, vector<2x8x8xf32> -> vector<2x8x8xf32>
    "tpu.trace_stop"() : () -> ()
    %112 = vector.shape_cast %111 : vector<2x8x8xf32> to vector<16x8xf32>
    %113 = arith.truncf %112 : vector<16x8xf32> to vector<16x8xbf16>
    %114 = vector.extract_strided_slice %30 {offsets = [16, 0], sizes = [8, 32], strides = [1, 1]} : vector<32x32xbf16> to vector<8x32xbf16>
    %cst_42 = arith.constant dense<0.000000e+00> : vector<16x32xf32>
    %115 = tpu.matmul %113, %114, %cst_42 {dimension_numbers = #tpu.dot_dimension_numbers<[1], [0], [0], [1], [0, 0, 1, 1], [], []>} : vector<16x8xbf16>, vector<8x32xbf16>, vector<16x32xf32> -> vector<16x32xf32>
    %116 = arith.addf %88, %115 : vector<16x32xf32>
    %117 = vector.extract_strided_slice %18 {offsets = [0, 24], sizes = [16, 8], strides = [1, 1]} : vector<16x64xf32> to vector<16x8xf32>
    %118 = vector.shape_cast %117 : vector<16x8xf32> to vector<2x8x8xf32>
    %119 = arith.truncf %118 : vector<2x8x8xf32> to vector<2x8x8xbf16>
    %120 = vector.extract_strided_slice %18 {offsets = [0, 56], sizes = [16, 8], strides = [1, 1]} : vector<16x64xf32> to vector<16x8xf32>
    %121 = vector.shape_cast %120 : vector<16x8xf32> to vector<2x8x8xf32>
    %122 = arith.truncf %121 : vector<2x8x8xf32> to vector<2x8x8xbf16>
    %123 = vector.extract_strided_slice %28 {offsets = [0, 0, 24], sizes = [2, 8, 8], strides = [1, 1, 1]} : vector<2x8x32xbf16> to vector<2x8x8xbf16>
    "tpu.trace_start"() <{level = 10 : i32, message = "bqd,bkd->bqk"}> : () -> ()
    %cst_43 = arith.constant dense<0.000000e+00> : vector<2x8x8xf32>
    %124 = tpu.matmul %119, %122, %cst_43 {dimension_numbers = #tpu.dot_dimension_numbers<[2], [2], [1], [1], [0, 0, 0, 1, 1, 1], [0], [0]>} : vector<2x8x8xbf16>, vector<2x8x8xbf16>, vector<2x8x8xf32> -> vector<2x8x8xf32>
    "tpu.trace_stop"() : () -> ()
    %125 = vector.broadcast %7 : vector<2x1x8xf32> to vector<2x8x8xf32>
    %126 = arith.addf %124, %125 : vector<2x8x8xf32>
    %cst_44 = arith.constant dense<0xFF800000> : vector<2x8xf32>
    %127 = vector.multi_reduction <maximumf>, %126, %cst_44 [2] : vector<2x8x8xf32> to vector<2x8xf32>
    %128 = vector.shape_cast %127 : vector<2x8xf32> to vector<2x8x1xf32>
    %129 = vector.broadcast %128 : vector<2x8x1xf32> to vector<2x8x8xf32>
    %130 = arith.subf %126, %129 : vector<2x8x8xf32>
    %131 = math.exp %130 : vector<2x8x8xf32>
    %cst_45 = arith.constant dense<0.000000e+00> : vector<2x8xf32>
    %132 = vector.multi_reduction <add>, %131, %cst_45 [2] : vector<2x8x8xf32> to vector<2x8xf32>
    %133 = vector.shape_cast %132 : vector<2x8xf32> to vector<2x8x1xf32>
    %134 = tpu.reciprocal %133 {approx = true} : vector<2x8x1xf32> -> vector<2x8x1xf32>
    %135 = vector.broadcast %134 : vector<2x8x1xf32> to vector<2x8x8xf32>
    %136 = arith.mulf %131, %135 : vector<2x8x8xf32>
    %137 = arith.addf %109, %136 : vector<2x8x8xf32>
    %138 = arith.truncf %136 : vector<2x8x8xf32> to vector<2x8x8xbf16>
    "tpu.trace_start"() <{level = 10 : i32, message = "bqk,bkd->bqd"}> : () -> ()
    %cst_46 = arith.constant dense<0.000000e+00> : vector<2x8x8xf32>
    %139 = tpu.matmul %138, %123, %cst_46 {dimension_numbers = #tpu.dot_dimension_numbers<[2], [1], [1], [2], [0, 0, 0, 1, 1, 2], [0], [0]>} : vector<2x8x8xbf16>, vector<2x8x8xbf16>, vector<2x8x8xf32> -> vector<2x8x8xf32>
    "tpu.trace_stop"() : () -> ()
    %140 = vector.shape_cast %139 : vector<2x8x8xf32> to vector<16x8xf32>
    %141 = arith.truncf %140 : vector<16x8xf32> to vector<16x8xbf16>
    %142 = vector.extract_strided_slice %30 {offsets = [24, 0], sizes = [8, 32], strides = [1, 1]} : vector<32x32xbf16> to vector<8x32xbf16>
    %cst_47 = arith.constant dense<0.000000e+00> : vector<16x32xf32>
    %143 = tpu.matmul %141, %142, %cst_47 {dimension_numbers = #tpu.dot_dimension_numbers<[1], [0], [0], [1], [0, 0, 1, 1], [], []>} : vector<16x8xbf16>, vector<8x32xbf16>, vector<16x32xf32> -> vector<16x32xf32>
    %144 = arith.addf %116, %143 : vector<16x32xf32>
    %c0_48 = arith.constant 0 : index
    %c0_49 = arith.constant 0 : index
    %c0_50 = arith.constant 0 : index
    %145 = vector.load %arg9[%c0_48, %c0_49, %c0_50] : memref<1x1x32xf32, #tpu.memory_space<vmem>>, vector<1x1x32xf32>
    %146 = vector.shape_cast %145 : vector<1x1x32xf32> to vector<1x32xf32>
    %147 = vector.broadcast %146 : vector<1x32xf32> to vector<16x32xf32>
    %148 = arith.addf %144, %147 : vector<16x32xf32>
    %149 = arith.addf %8, %148 : vector<16x32xf32>
    %c0_51 = arith.constant 0 : index
    %c0_52 = arith.constant 0 : index
    %c0_53 = arith.constant 0 : index
    %150 = vector.load %arg14[%c0_51, %c0_52, %c0_53] : memref<1x1x32xf32, #tpu.memory_space<vmem>>, vector<1x1x32xf32>
    %151 = vector.shape_cast %150 : vector<1x1x32xf32> to vector<1x32xf32>
    %c0_54 = arith.constant 0 : index
    %c0_55 = arith.constant 0 : index
    %c0_56 = arith.constant 0 : index
    %152 = vector.load %arg15[%c0_54, %c0_55, %c0_56] : memref<1x1x32xf32, #tpu.memory_space<vmem>>, vector<1x1x32xf32>
    %153 = vector.shape_cast %152 : vector<1x1x32xf32> to vector<1x32xf32>
    %cst_57 = arith.constant dense<0.000000e+00> : vector<16xf32>
    %154 = vector.multi_reduction <add>, %149, %cst_57 [1] : vector<16x32xf32> to vector<16xf32>
    %155 = vector.shape_cast %154 : vector<16xf32> to vector<16x1xf32>
    %cst_58 = arith.constant 3.200000e+01 : f32
    %156 = vector.broadcast %cst_58 : f32 to vector<16x1xf32>
    %157 = arith.divf %155, %156 : vector<16x1xf32>
    %158 = vector.broadcast %157 : vector<16x1xf32> to vector<16x32xf32>
    %159 = arith.subf %149, %158 : vector<16x32xf32>
    %160 = arith.mulf %159, %159 : vector<16x32xf32>
    %cst_59 = arith.constant dense<0.000000e+00> : vector<16xf32>
    %161 = vector.multi_reduction <add>, %160, %cst_59 [1] : vector<16x32xf32> to vector<16xf32>
    %162 = vector.shape_cast %161 : vector<16xf32> to vector<16x1xf32>
    %cst_60 = arith.constant 3.200000e+01 : f32
    %163 = vector.broadcast %cst_60 : f32 to vector<16x1xf32>
    %164 = arith.divf %162, %163 : vector<16x1xf32>
    %cst_61 = arith.constant 9.99999974E-6 : f32
    %165 = vector.broadcast %cst_61 : f32 to vector<16x1xf32>
    %166 = arith.addf %164, %165 : vector<16x1xf32>
    %167 = math.rsqrt %166 : vector<16x1xf32>
    %168 = vector.broadcast %167 : vector<16x1xf32> to vector<16x32xf32>
    %169 = arith.mulf %159, %168 : vector<16x32xf32>
    %170 = vector.broadcast %151 : vector<1x32xf32> to vector<16x32xf32>
    %171 = arith.mulf %169, %170 : vector<16x32xf32>
    %172 = vector.broadcast %153 : vector<1x32xf32> to vector<16x32xf32>
    %173 = arith.addf %171, %172 : vector<16x32xf32>
    %174 = arith.truncf %173 : vector<16x32xf32> to vector<16x32xbf16>
    %c0_62 = arith.constant 0 : index
    %c0_63 = arith.constant 0 : index
    %c0_64 = arith.constant 0 : index
    %175 = vector.load %arg10[%c0_62, %c0_63, %c0_64] : memref<1x32x64xbf16, #tpu.memory_space<vmem>>, vector<1x32x64xbf16>
    %176 = vector.shape_cast %175 : vector<1x32x64xbf16> to vector<32x64xbf16>
    %cst_65 = arith.constant dense<0.000000e+00> : vector<16x64xf32>
    %177 = tpu.matmul %174, %176, %cst_65 {dimension_numbers = #tpu.dot_dimension_numbers<[1], [0], [0], [1], [0, 0, 1, 1], [], []>} : vector<16x32xbf16>, vector<32x64xbf16>, vector<16x64xf32> -> vector<16x64xf32>
    %c0_66 = arith.constant 0 : index
    %c0_67 = arith.constant 0 : index
    %c0_68 = arith.constant 0 : index
    %178 = vector.load %arg11[%c0_66, %c0_67, %c0_68] : memref<1x1x64xf32, #tpu.memory_space<vmem>>, vector<1x1x64xf32>
    %179 = vector.shape_cast %178 : vector<1x1x64xf32> to vector<1x64xf32>
    %180 = vector.broadcast %179 : vector<1x64xf32> to vector<16x64xf32>
    %181 = arith.addf %177, %180 : vector<16x64xf32>
    %cst_69 = arith.constant 0.000000e+00 : f32
    %182 = vector.broadcast %cst_69 : f32 to vector<16x64xf32>
    %183 = arith.maximumf %181, %182 : vector<16x64xf32>
    %184 = arith.truncf %183 : vector<16x64xf32> to vector<16x64xbf16>
    %c0_70 = arith.constant 0 : index
    %c0_71 = arith.constant 0 : index
    %c0_72 = arith.constant 0 : index
    %185 = vector.load %arg12[%c0_70, %c0_71, %c0_72] : memref<1x64x32xbf16, #tpu.memory_space<vmem>>, vector<1x64x32xbf16>
    %186 = vector.shape_cast %185 : vector<1x64x32xbf16> to vector<64x32xbf16>
    %cst_73 = arith.constant dense<0.000000e+00> : vector<16x32xf32>
    %187 = tpu.matmul %184, %186, %cst_73 {dimension_numbers = #tpu.dot_dimension_numbers<[1], [0], [0], [1], [0, 0, 1, 1], [], []>} : vector<16x64xbf16>, vector<64x32xbf16>, vector<16x32xf32> -> vector<16x32xf32>
    %c0_74 = arith.constant 0 : index
    %c0_75 = arith.constant 0 : index
    %c0_76 = arith.constant 0 : index
    %188 = vector.load %arg13[%c0_74, %c0_75, %c0_76] : memref<1x1x32xf32, #tpu.memory_space<vmem>>, vector<1x1x32xf32>
    %189 = vector.shape_cast %188 : vector<1x1x32xf32> to vector<1x32xf32>
    %190 = vector.broadcast %189 : vector<1x32xf32> to vector<16x32xf32>
    %191 = arith.addf %187, %190 : vector<16x32xf32>
    %192 = arith.addf %173, %191 : vector<16x32xf32>
    %c0_77 = arith.constant 0 : index
    %c0_78 = arith.constant 0 : index
    %c0_79 = arith.constant 0 : index
    %193 = vector.load %arg16[%c0_77, %c0_78, %c0_79] : memref<1x1x32xf32, #tpu.memory_space<vmem>>, vector<1x1x32xf32>
    %194 = vector.shape_cast %193 : vector<1x1x32xf32> to vector<1x32xf32>
    %c0_80 = arith.constant 0 : index
    %c0_81 = arith.constant 0 : index
    %c0_82 = arith.constant 0 : index
    %195 = vector.load %arg17[%c0_80, %c0_81, %c0_82] : memref<1x1x32xf32, #tpu.memory_space<vmem>>, vector<1x1x32xf32>
    %196 = vector.shape_cast %195 : vector<1x1x32xf32> to vector<1x32xf32>
    %cst_83 = arith.constant dense<0.000000e+00> : vector<16xf32>
    %197 = vector.multi_reduction <add>, %192, %cst_83 [1] : vector<16x32xf32> to vector<16xf32>
    %198 = vector.shape_cast %197 : vector<16xf32> to vector<16x1xf32>
    %cst_84 = arith.constant 3.200000e+01 : f32
    %199 = vector.broadcast %cst_84 : f32 to vector<16x1xf32>
    %200 = arith.divf %198, %199 : vector<16x1xf32>
    %201 = vector.broadcast %200 : vector<16x1xf32> to vector<16x32xf32>
    %202 = arith.subf %192, %201 : vector<16x32xf32>
    %203 = arith.mulf %202, %202 : vector<16x32xf32>
    %cst_85 = arith.constant dense<0.000000e+00> : vector<16xf32>
    %204 = vector.multi_reduction <add>, %203, %cst_85 [1] : vector<16x32xf32> to vector<16xf32>
    %205 = vector.shape_cast %204 : vector<16xf32> to vector<16x1xf32>
    %cst_86 = arith.constant 3.200000e+01 : f32
    %206 = vector.broadcast %cst_86 : f32 to vector<16x1xf32>
    %207 = arith.divf %205, %206 : vector<16x1xf32>
    %cst_87 = arith.constant 9.99999974E-6 : f32
    %208 = vector.broadcast %cst_87 : f32 to vector<16x1xf32>
    %209 = arith.addf %207, %208 : vector<16x1xf32>
    %210 = math.rsqrt %209 : vector<16x1xf32>
    %211 = vector.broadcast %210 : vector<16x1xf32> to vector<16x32xf32>
    %212 = arith.mulf %202, %211 : vector<16x32xf32>
    %213 = vector.broadcast %194 : vector<1x32xf32> to vector<16x32xf32>
    %214 = arith.mulf %212, %213 : vector<16x32xf32>
    %215 = vector.broadcast %196 : vector<1x32xf32> to vector<16x32xf32>
    %216 = arith.addf %214, %215 : vector<16x32xf32>
    %217 = vector.shape_cast %216 : vector<16x32xf32> to vector<2x8x32xf32>
    %c0_88 = arith.constant 0 : index
    %c0_89 = arith.constant 0 : index
    %c0_90 = arith.constant 0 : index
    %218 = vector.load %arg18[%c0_88, %c0_89, %c0_90] : memref<2x8x32xf32, #tpu.memory_space<vmem>>, vector<2x8x32xf32>
    tpu.vector_store %arg18[%c0_88, %c0_89, %c0_90], %217 {strides = array<i32>} : memref<2x8x32xf32, #tpu.memory_space<vmem>>, vector<2x8x32xf32>,
    %cst_91 = arith.constant 2.500000e-01 : f32
    %219 = vector.broadcast %cst_91 : f32 to vector<2x8x8xf32>
    %220 = arith.mulf %137, %219 : vector<2x8x8xf32>
    %c0_92 = arith.constant 0 : index
    %c0_93 = arith.constant 0 : index
    %c0_94 = arith.constant 0 : index
    %221 = vector.load %arg19[%c0_92, %c0_93, %c0_94] : memref<2x8x8xf32, #tpu.memory_space<vmem>>, vector<2x8x8xf32>
    tpu.vector_store %arg19[%c0_92, %c0_93, %c0_94], %220 {strides = array<i32>} : memref<2x8x8xf32, #tpu.memory_space<vmem>>, vector<2x8x8xf32>,
    return
  }
  func.func @transform_0(%arg0: i32) -> (i32, i32, i32) {
    %c0_i32 = arith.constant 0 : i32
    %c0_i32_0 = arith.constant 0 : i32
    %c0_i32_1 = arith.constant 0 : i32
    %c0_i32_2 = arith.constant 0 : i32
    return %c0_i32, %c0_i32_0, %c0_i32_1 : i32, i32, i32
  }
  func.func @transform_1(%arg0: i32) -> (i32, i32, i32) {
    %c0_i32 = arith.constant 0 : i32
    %c0_i32_0 = arith.constant 0 : i32
    %c0_i32_1 = arith.constant 0 : i32
    %c0_i32_2 = arith.constant 0 : i32
    return %c0_i32, %c0_i32_0, %c0_i32_1 : i32, i32, i32
  }
  func.func @transform_2(%arg0: i32) -> (i32, i32, i32) {
    %c0_i32 = arith.constant 0 : i32
    %c0_i32_0 = arith.constant 0 : i32
    %c0_i32_1 = arith.constant 0 : i32
    %c0_i32_2 = arith.constant 0 : i32
    return %c0_i32, %c0_i32_0, %c0_i32_1 : i32, i32, i32
  }
  func.func @transform_3(%arg0: i32) -> (i32, i32, i32) {
    %c0_i32 = arith.constant 0 : i32
    %c0_i32_0 = arith.constant 0 : i32
    %c0_i32_1 = arith.constant 0 : i32
    return %arg0, %c0_i32, %c0_i32_0 : i32, i32, i32
  }
  func.func @transform_4(%arg0: i32) -> (i32, i32, i32) {
    %c0_i32 = arith.constant 0 : i32
    %c0_i32_0 = arith.constant 0 : i32
    %c0_i32_1 = arith.constant 0 : i32
    return %arg0, %c0_i32, %c0_i32_0 : i32, i32, i32
  }
  func.func @transform_5(%arg0: i32) -> (i32, i32, i32) {
    %c0_i32 = arith.constant 0 : i32
    %c0_i32_0 = arith.constant 0 : i32
    %c0_i32_1 = arith.constant 0 : i32
    return %arg0, %c0_i32, %c0_i32_0 : i32, i32, i32
  }
  func.func @transform_6(%arg0: i32) -> (i32, i32, i32) {
    %c0_i32 = arith.constant 0 : i32
    %c0_i32_0 = arith.constant 0 : i32
    %c0_i32_1 = arith.constant 0 : i32
    return %arg0, %c0_i32, %c0_i32_0 : i32, i32, i32
  }
  func.func @transform_7(%arg0: i32) -> (i32, i32, i32) {
    %c0_i32 = arith.constant 0 : i32
    %c0_i32_0 = arith.constant 0 : i32
    %c0_i32_1 = arith.constant 0 : i32
    return %arg0, %c0_i32, %c0_i32_0 : i32, i32, i32
  }
  func.func @transform_8(%arg0: i32) -> (i32, i32, i32) {
    %c0_i32 = arith.constant 0 : i32
    %c0_i32_0 = arith.constant 0 : i32
    %c0_i32_1 = arith.constant 0 : i32
    return %arg0, %c0_i32, %c0_i32_0 : i32, i32, i32
  }
  func.func @transform_9(%arg0: i32) -> (i32, i32, i32) {
    %c0_i32 = arith.constant 0 : i32
    %c0_i32_0 = arith.constant 0 : i32
    %c0_i32_1 = arith.constant 0 : i32
    return %arg0, %c0_i32, %c0_i32_0 : i32, i32, i32
  }
  func.func @transform_10(%arg0: i32) -> (i32, i32, i32) {
    %c0_i32 = arith.constant 0 : i32
    %c0_i32_0 = arith.constant 0 : i32
    %c0_i32_1 = arith.constant 0 : i32
    return %arg0, %c0_i32, %c0_i32_0 : i32, i32, i32
  }
  func.func @transform_11(%arg0: i32) -> (i32, i32, i32) {
    %c0_i32 = arith.constant 0 : i32
    %c0_i32_0 = arith.constant 0 : i32
    %c0_i32_1 = arith.constant 0 : i32
    return %arg0, %c0_i32, %c0_i32_0 : i32, i32, i32
  }
  func.func @transform_12(%arg0: i32) -> (i32, i32, i32) {
    %c0_i32 = arith.constant 0 : i32
    %c0_i32_0 = arith.constant 0 : i32
    %c0_i32_1 = arith.constant 0 : i32
    return %arg0, %c0_i32, %c0_i32_0 : i32, i32, i32
  }
  func.func @transform_13(%arg0: i32) -> (i32, i32, i32) {
    %c0_i32 = arith.constant 0 : i32
    %c0_i32_0 = arith.constant 0 : i32
    %c0_i32_1 = arith.constant 0 : i32
    return %arg0, %c0_i32, %c0_i32_0 : i32, i32, i32
  }
  func.func @transform_14(%arg0: i32) -> (i32, i32, i32) {
    %c0_i32 = arith.constant 0 : i32
    %c0_i32_0 = arith.constant 0 : i32
    %c0_i32_1 = arith.constant 0 : i32
    return %arg0, %c0_i32, %c0_i32_0 : i32, i32, i32
  }
  func.func @transform_15(%arg0: i32) -> (i32, i32, i32) {
    %c0_i32 = arith.constant 0 : i32
    %c0_i32_0 = arith.constant 0 : i32
    %c0_i32_1 = arith.constant 0 : i32
    return %arg0, %c0_i32, %c0_i32_0 : i32, i32, i32
  }
  func.func @transform_16(%arg0: i32) -> (i32, i32, i32) {
    %c0_i32 = arith.constant 0 : i32
    %c0_i32_0 = arith.constant 0 : i32
    %c0_i32_1 = arith.constant 0 : i32
    return %arg0, %c0_i32, %c0_i32_0 : i32, i32, i32
  }
  func.func @transform_17(%arg0: i32) -> (i32, i32, i32) {
    %c0_i32 = arith.constant 0 : i32
    %c0_i32_0 = arith.constant 0 : i32
    %c0_i32_1 = arith.constant 0 : i32
    %c0_i32_2 = arith.constant 0 : i32
    return %c0_i32, %c0_i32_0, %c0_i32_1 : i32, i32, i32
  }
  func.func @transform_18(%arg0: i32) -> (i32, i32, i32) {
    %c0_i32 = arith.constant 0 : i32
    %c0_i32_0 = arith.constant 0 : i32
    %c0_i32_1 = arith.constant 0 : i32
    %c0_i32_2 = arith.constant 0 : i32
    return %c0_i32, %c0_i32_0, %c0_i32_1 : i32, i32, i32
  }
}

</mosaic_0001>

<bundles_post_ra>
// kernel: allentransformer_oframe_forward.2
= control target key start
LH: loop header
LB: loop body
LE: loop exit
PB: predicated region body
PF: predicated region fallthrough
CT: control target
= control target key end

     0   :  { %s2501_s0 = inlined_call_operand.vmem [shape: f32[2,8,32], index: 0, kind: input, shape index: {}]   ;;  %s2502_s1 = inlined_call_operand.vmem [shape: f32[2,8,32], index: 1, kind: input, shape index: {}]   ;;  %s2503_s2 = inlined_call_operand.vmem [shape: f32[2,1,8], index: 2, kind: input, shape index: {}]   ;;  %s2504_s3 = inlined_call_operand.vmem [shape: bf16[2,32,64], index: 3, kind: input, shape index: {}]   ;;  %s2505_s4 = inlined_call_operand.vmem [shape: f32[2,1,64], index: 4, kind: input, shape index: {}]   ;;  %s2506_s5 = inlined_call_operand.vmem [shape: bf16[2,32,32], index: 5, kind: input, shape index: {}]   ;;  %s2507_s6 = inlined_call_operand.vmem [shape: f32[2,1,32], index: 6, kind: input, shape index: {}]   ;;  %s2508_s7 = inlined_call_operand.vmem [shape: bf16[2,32,32], index: 7, kind: input, shape index: {}]   ;;  %s2509_s8 = inlined_call_operand.vmem [shape: f32[2,1,32], index: 8, kind: input, shape index: {}]   ;;  %s2510_s9 = inlined_call_operand.vmem [shape: bf16[2,32,64], index: 9, kind: input, shape index: {}]   ;;  %s2511_s10 = inlined_call_operand.vmem [shape: f32[2,1,64], index: 10, kind: input, shape index: {}]   ;;  %s2512_s11 = inlined_call_operand.vmem [shape: bf16[2,64,32], index: 11, kind: input, shape index: {}]   ;;  %s2513_s12 = inlined_call_operand.vmem [shape: f32[2,1,32], index: 12, kind: input, shape index: {}]   ;;  %s2514_s13 = inlined_call_operand.vmem [shape: f32[2,1,32], index: 13, kind: input, shape index: {}]   ;;  %s2515_s14 = inlined_call_operand.vmem [shape: f32[2,1,32], index: 14, kind: input, shape index: {}]   ;;  %s2516_s15 = inlined_call_operand.vmem [shape: f32[2,1,32], index: 15, kind: input, shape index: {}]   ;;  %s2517_s16 = inlined_call_operand.vmem [shape: f32[2,1,32], index: 16, kind: input, shape index: {}]   ;;  %s2518_s17 = inlined_call_operand.vmem [shape: f32[2,8,32], index: 17, kind: output, shape index: {0}]   ;;  %s2519_s18 = inlined_call_operand.hbm [shape: f32[2,8,8], index: 18, kind: output, shape index: {1}]  }
   0x1   :  { %2528 = sst [smem:[#allocation7_spill]] %s2501_s0 }
   0x2   :  { %2529 = sst [smem:[#allocation8_spill]] %s2502_s1 }
   0x3   :  { %2530 = sst [smem:[#allocation9_spill]] %s2503_s2 }
   0x4   :  { %2531 = sst [smem:[#allocation10_spill]] %s2504_s3 }
   0x5   :  { %2532 = sst [smem:[#allocation11_spill]] %s2506_s5 }
   0x6   :  { %2533 = sst [smem:[#allocation12_spill]] %s2508_s7 }
   0x7   :  { %2534 = sst [smem:[#allocation13_spill]] %s2510_s9 }
   0x8   :  { %2535 = sst [smem:[#allocation14_spill]] %s2511_s10 }
   0x9   :  { %2536 = sst [smem:[#allocation15_spill]] %s2518_s17 }
   0xa   :  { %2537 = sst [smem:[#allocation16_spill]] %s2519_s18 }
   0xb   :  { %24 = vsyncpa [#allocation3], 0  ;;  %s2162_s27 = smov 0  }
   0xc LB: > { %2538 = sst [smem:[#allocation5_spill]] %s2054_s27  ;;  %s2168_s28 = sadd.s32 4294967295, %s2054_s27   ;;  %s2054_s27 = sphi %s2162_s27, %s30_s27  }
   0xd   : > { %2539 = sst [smem:[#allocation6_spill]] %s2168_s28  ;;  %p1845_p0 = scmp.ge.s32.totalorder %s2054_s27, 1 }
   0xe   : > { %p618_p1 = scmp.lt.s32.totalorder %s2054_s27, 3 }
  0x10   : > { %p619_p2 = pnand %p1845_p0, %p618_p1 }
  0x11   : > { %p714_p3 = scmp.lt.s32.totalorder (!%p619_p2), %s2168_s28, 1  ;;  %s2540_s3 = sld [smem:[#allocation10_spill]] (!%p619_p2) }
  0x12   : > { %622 = sbr.rel (%p619_p2) target bundleno = 2632 (0xa48), region = 88  ;;  %s2541_s5 = sld [smem:[#allocation11_spill]] (!%p619_p2) }
  0x13   : > { %s2542_s7 = sld [smem:[#allocation12_spill]] (!%p619_p2) }
  0x14   : > { %s2543_s9 = sld [smem:[#allocation13_spill]] (!%p619_p2) }
  0x15   : > { %s2545_s26 = sld [smem:[#allocation6_spill]] (!%p619_p2) }
  0x17   : > { %s2174_s29 = scalar_select %p714_p3, %s2168_s28, 1 }
  0x19   : > { %s1925_s30 = sshll.u32 %s2174_s29, 4  ;;  %s1929_s25 = sshll.u32 %s2174_s29, 5 }
  0x1a   : > { %s718_s22 = scalar_lea.vmem %s2540_s3, %s1925_s30  ;;  %s2187_s24 = scalar_lea.vmem %s2541_s5, %s1925_s30 }
  0x1b   : > { %s2196_s28 = scalar_lea.vmem %s2542_s7, %s1925_s30  ;;  %s2205_s3 = scalar_lea.vmem %s2543_s9, %s1925_s30 }
  0x1c   : > { %s2215_s17 = scalar_lea.vmem %s2512_s11, %s1929_s25  ;;  %s756_s20 = scalar_lea.vmem %s2514_s13, %s2174_s29 }
  0x1d   : > { %s759_s9 = scalar_lea.vmem %s2515_s14, %s2174_s29  ;;  %s765_s25 = scalar_lea.vmem %s2517_s16, %s2174_s29 }
  0x1e   : > { %p1856_p4 = scmp.ne.s32.totalorder %s2545_s26, 0 }
  0x1f   : > { %s2546_s0 = sld [smem:[#allocation7_spill]] (!%p1856_p4) }
  0x20   : > { %770 = sbr.rel (%p1856_p4) target bundleno = 40 (0x28), region = 92  ;;  %s2547_s2 = sld [smem:[#allocation15_spill]] (!%p1856_p4) }
  0x25   : > { %v771_v0 = vld [vmem:[%s2546_s0] sm:$0xff]  ;;  %vm773_vm0 = vcmask 261120   ;;  %v772_v1 = vld [vmem:[%s2546_s0 + $0x8] sm:$0xff] }
  0x26   : > { %774 = vst.msk [vmem:[%s2547_s2] sm:$0xff] %vm773_vm0, %v771_v0 }
  0x27   : > { %775 = vst.msk [vmem:[%s2547_s2 + $0x8] sm:$0xff] %vm773_vm0, %v772_v1 }
  0x28 PF: > { %v1931_v2 = vld [vmem:[%s718_s22 + $0x8] sm:$0xff]  ;;  %s2548_s26 = sld [smem:[#allocation15_spill]]  ;;  %v1930_v7 = vld [vmem:[%s718_s22] sm:$0xff]  ;;  %vm807_vm1 = vcmask 261120   ;;  %s2550_s10 = scalar_lea.vmem %s2505_s4, %s2174_s29  ;;  %vm882_vm2 = vcmask 64512   ;;  %vm955_vm3 = vcmask 1043456  }
  0x29   : > { %s2549_s30 = sld [smem:[#allocation8_spill]]  ;;  %817 = vmatpush.bf16.msra.mxu0 %v1931_v2  ;;  %v1965_v11 = vld [vmem:[%s2550_s10] ss:$0 sm:$0xff]  ;;  %s2056_s22 = smov 120   ;;  %v1933_v22 = vld [vmem:[%s2187_s24 + $0x8] sm:$0xff]  ;;  %vm1575_vm11 = vcmask 523264  }
  0x2a   : > { %s2057_s27 = smov 96   ;;  %s2058_s7 = smov 88   ;;  %855 = vmatpush.bf16.msra.mxu1 %v1933_v22  ;;  %v1932_v23 = vld [vmem:[%s2187_s24] sm:$0xff] }
  0x2b   : > { %s2551_s1 = sld [smem:[#allocation9_spill]]  ;;  %s2552_s5 = scalar_lea.vmem %s2507_s6, %s2174_s29 }
  0x2c   : > { %v1966_v41 = vld [vmem:[%s2552_s5] ss:$0 sm:$0xff]  ;;  %s2059_s2 = smov 80   ;;  %s2553_s19 = scalar_lea.vmem %s2509_s8, %s2174_s29 }
  0x2d   : > { %818 = vmatpush.bf16.msra.mxu0 %v1930_v7  ;;  %s2065_s21 = smov 128   ;;  %s2066_s5 = smov 8  }
  0x2e   : > { %v2253_v3 = vld [vmem:[%s2548_s26] sm:$0xff]  ;;  %v2258_v4 = vld [vmem:[%s2548_s26 + $0x8] sm:$0xff]  ;;  %856 = vmatpush.bf16.msra.mxu1 %v1932_v23 }
  0x2f   : > { %v778_v5 = vld [vmem:[%s2549_s30] sm:$0xff]  ;;  %v779_v6 = vld [vmem:[%s2549_s30 + $0x8] sm:$0xff]  ;;  %v825_v24 = vpack.c.bf16 %v2258_v4, %v2253_v3 }
  0x30   : > { %v784_v8 = vadd.f32 %v778_v5, %v2253_v3  ;;  %v785_v9 = vadd.f32 %v779_v6, %v2258_v4 }
  0x31   : > { %1874 = vmatmul.msk.bf16.vlgmr.msra.gmra.mxu1 %vm807_vm1, %v825_v24  ;;  %v780_v35 = vld [vmem:[%s2551_s1] sm:$0x1]  ;;  %v781_v56 = vld [vmem:[%s2551_s1 + $0x1] sm:$0x1] }
  0x32   : > { %v786_v10 = vpack.c.bf16 %v785_v9, %v784_v8  ;;  %v782_v36 = vmul.f32 -1e+30, %v780_v35  ;;  %v783_v57 = vmul.f32 -1e+30, %v781_v56 }
  0x34   : > { %1865 = vmatmul.msk.bf16.vlgmr.msra.gmra.mxu0 %vm807_vm1, %v786_v10  ;;  %v2302_v37 = vperm.slane %v782_v36, 0  ;;  %v2322_v58 = vperm.slane %v783_v57, 0 }
  0xae   : > { %v858_v42 = vpop.f32.mrf.mxu1 }
  0xaf   : > { %v859_v45 = vadd.f32 %v1966_v41, %v858_v42 }
  0xb1   : > { %v820_v12 = vpop.f32.mrf.mxu0  ;;  %v863_v46 = vpack.c.bf16 %v859_v45, %v859_v45 }
  0xb2   : > { %v821_v13 = vadd.f32 %v1965_v11, %v820_v12 }
  0xb3   : > { %v1065_v47 = vunpack.c.l.b16 %v863_v46  ;;  %v957_v6 = vsel %vm955_vm3, %v863_v46, 0 }
  0xb4   : > { %v869_v14 = vpack.c.bf16 %v821_v13, %v821_v13  ;;  %966 = vmatpush.bf16.msrb.mxu0 %v957_v6 }
  0xb5   : > { %v2313_v52 = vpack.c.b16 %v1065_v47, %v1065_v47  ;;  %v866_v47 = vld [vmem:[%s2196_s28 + $0x4] sm:$0xf] }
  0xb6   : > { %v878_v15 = vunpack.c.l.b16 %v869_v14  ;;  %v860_v63 = vpop.f32.mrf.mxu1 }
  0xb7   : > { %v861_v0 = vadd.f32 %v1966_v41, %v860_v63  ;;  %v865_v63 = vld [vmem:[%s2196_s28] sm:$0xf] }
  0xb8   : > { %v2274_v16 = vpack.c.b16 %v878_v15, %v878_v15 }
  0xb9   : > { %v822_v17 = vpop.f32.mrf.mxu0  ;;  %v864_v1 = vpack.c.bf16 %v861_v0, %v861_v0  ;;  %v1137_v0 = vsel %vm955_vm3, %v865_v63, 0 }
  0xba   : > { %v823_v18 = vadd.f32 %v1965_v11, %v822_v17  ;;  %992 = vrot.lane.b32.xlu1 %v2274_v16, %s2056_s22  ;;  %880 = vrot.lane.b32.xlu0 %v2274_v16, %s2057_s27 }
  0xbb   : > { %v1089_v2 = vunpack.c.l.b16 %v864_v1  ;;  %v976_v7 = vsel %vm955_vm3, %v864_v1, 0 }
  0xbc   : > { %v870_v19 = vpack.c.bf16 %v823_v18, %v823_v18  ;;  %985 = vmatpush.bf16.msrb.mxu1 %v976_v7 }
  0xbd   : > { %v2328_v5 = vpack.c.b16 %v1089_v2, %v1089_v2 }
  0xbe   : > { %v903_v20 = vunpack.c.l.b16 %v870_v19 }
  0xc0   : > { %v2279_v21 = vpack.c.b16 %v903_v20, %v903_v20 }
  0xc2   : > { %1017 = vrot.lane.b32.xlu2 %v2279_v21, %s2058_s7  ;;  %905 = vrot.lane.b32.xlu1 %v2279_v21, %s2057_s27  ;;  %s2061_s27 = smov 72  }
  0xc3   : > { %994 = vrot.lane.b32.xlu0 %v2274_v16, %s2058_s7  ;;  %s2062_s7 = smov 104  }
  0xca   : > { %1015 = vrot.lane.b32.xlu2 %v2279_v21, %s2056_s22 }
 0x11c   : > { %v1018_v28 = vpop.permute.xlu2 %1017 }
 0x11d   : > { %v1023_v33 = vsel %vm882_vm2, %v1018_v28, 0 }
 0x124   : > { %v1016_v34 = vpop.permute.xlu2 %1015 }
 0x12c   : > { %v993_v25 = vpop.permute.xlu1 %992  ;;  %v881_v26 = vpop.permute.xlu0 %880 }
 0x12d   : > { %v887_v27 = vsel %vm882_vm2, %v881_v26, 0 }
 0x12e   : > { %896 = vmatpush.bf16.xpose.msra.mxu2 %v887_v27 }
 0x134   : > { %v906_v29 = vpop.permute.xlu1 %905 }
 0x135   : > { %v995_v30 = vpop.permute.xlu0 %994  ;;  %1875 = vmatmul.msk.bf16.vlgmr.msra.gmra.mxu2 %vm882_vm2, %v869_v14  ;;  %v911_v31 = vsel %vm882_vm2, %v906_v29, 0 }
 0x136   : > { %920 = vmatpush.bf16.xpose.msra.mxu3 %v911_v31  ;;  %v1000_v32 = vsel %vm882_vm2, %v995_v30, 0 }
 0x137   : > { %1009 = vmatpush.bf16.xpose.msrb.mxu2 %v1000_v32 }
 0x13d   : > { %1876 = vmatmul.msk.bf16.vlgmr.msra.gmra.mxu3 %vm882_vm2, %v870_v19 }
 0x13e   : > { %1032 = vmatpush.bf16.xpose.msrb.mxu3 %v1023_v33 }
 0x145   : > { %1879 = vmatmul.msk.bf16.vlgmr.msrb.gmra.mxu2 %vm882_vm2, %v993_v25 }
 0x146   : > { %1146 = vmatpush.bf16.msra.mxu3 %v1137_v0 }
 0x14d   : > { %1880 = vmatmul.msk.bf16.vlgmr.msrb.gmra.mxu3 %vm882_vm2, %v1016_v34 }
 0x1b8   : > { %v898_v38 = vpop.f32.mrf.mxu2 }
 0x1b9   : > { %v899_v39 = vadd.f32 %v898_v38, %v2302_v37 }
 0x1bb   : > { %v926_v40 = vsel %vm882_vm2, %v899_v39, -inf }
 0x1bc   : > { %927 = vmax.xlane.f32.xlu0 %v926_v40 }
 0x1c0   : > { %v900_v43 = vpop.f32.mrf.mxu2  ;;  %v922_v44 = vpop.f32.mrf.mxu3 }
 0x1c1   : > { %v923_v59 = vadd.f32 %v922_v44, %v2322_v58 }
 0x1c3   : > { %v929_v60 = vsel %vm882_vm2, %v923_v59, -inf }
 0x1c8   : > { %v924_v48 = vpop.f32.mrf.mxu3  ;;  %v1011_v49 = vpop.f32.mrf.mxu2 }
 0x1c9   : > { %v1012_v50 = vadd.f32 %v1011_v49, %v2302_v37  ;;  %v1117_v48 = vsel %vm955_vm3, %v866_v47, 0 }
 0x1ca   : > { %1126 = vmatpush.bf16.msra.mxu2 %v1117_v48 }
 0x1cb   : > { %v1038_v51 = vsel %vm882_vm2, %v1012_v50, -inf }
 0x1cc   : > { %1039 = vmax.xlane.f32.xlu1 %v1038_v51 }
 0x1d0   : > { %v1034_v53 = vpop.f32.mrf.mxu3  ;;  %1067 = vrot.lane.b32.xlu0 %v2313_v52, %s2056_s22  ;;  %v1013_v54 = vpop.f32.mrf.mxu2 }
 0x1d1   : > { %v1035_v61 = vadd.f32 %v1034_v53, %v2322_v58 }
 0x1d3   : > { %v1041_v62 = vsel %vm882_vm2, %v1035_v61, -inf }
 0x1d8   : > { %v1036_v55 = vpop.f32.mrf.mxu3 }
 0x1e5   : > { %1155 = vrot.lane.b32.xlu1 %v2274_v16, %s2059_s2 }
 0x1fa   : > { %930 = vmax.xlane.f32.xlu0 %v929_v60 }
 0x20f   : > { %1042 = vmax.xlane.f32.xlu1 %v1041_v62 }
 0x228   : > { %1091 = vrot.lane.b32.xlu1 %v2328_v5, %s2056_s22  ;;  %s2060_s22 = smov 112  }
 0x22f   : > { %v928_v8 = vpop.xlane.xlu0 %927 }
 0x230   : > { %v932_v9 = vsub.f32 %v899_v39, %v928_v8 }
 0x232   : > { %v934_v10 = vmul.f32 1.442695, %v932_v9 }
 0x234   : > { %1974 = vpow2.f32 %v934_v10 }
 0x23a   : > { %v1975_v11 = vpop.eup %1974 }
 0x23b   : > { %v938_v12 = vsel %vm882_vm2, %v1975_v11, 0.0 }
 0x23c   : > { %939 = vadd.xlane.f32.xlu2 %v938_v12 }
 0x23f   : > { %v1040_v13 = vpop.xlane.xlu1 %1039 }
 0x240   : > { %v1044_v14 = vsub.f32 %v1012_v50, %v1040_v13 }
 0x242   : > { %v1046_v15 = vmul.f32 1.442695, %v1044_v14  ;;  %v1068_v17 = vpop.permute.xlu0 %1067 }
 0x243   : > { %v1073_v18 = vsel %vm955_vm3, %v1068_v17, 0 }
 0x244   : > { %1976 = vpow2.f32 %v1046_v15  ;;  %1082 = vmatpush.bf16.msra.mxu0 %v1073_v18 }
 0x24a   : > { %v1977_v19 = vpop.eup %1976 }
 0x24b   : > { %v1050_v20 = vsel %vm882_vm2, %v1977_v19, 0.0 }
 0x24c   : > { %1051 = vadd.xlane.f32.xlu2 %v1050_v20 }
 0x257   : > { %v1156_v23 = vpop.permute.xlu1 %1155 }
 0x258   : > { %v1161_v40 = vsel %vm882_vm2, %v1156_v23, 0 }
 0x264   : > { %1153 = vrot.lane.b32.xlu2 %v2274_v16, %s2060_s22 }
 0x26d   : > { %v931_v22 = vpop.xlane.xlu0 %930 }
 0x26e   : > { %v933_v24 = vsub.f32 %v923_v59, %v931_v22 }
 0x270   : > { %v936_v25 = vmul.f32 1.442695, %v933_v24 }
 0x272   : > { %1978 = vpow2.f32 %v936_v25 }
 0x278   : > { %v1979_v29 = vpop.eup %1978 }
 0x279   : > { %v941_v30 = vsel %vm882_vm2, %v1979_v29, 0.0 }
 0x282   : > { %v1043_v26 = vpop.xlane.xlu1 %1042 }
 0x283   : > { %v1045_v27 = vsub.f32 %v1035_v61, %v1043_v26 }
 0x285   : > { %v1048_v28 = vmul.f32 1.442695, %v1045_v27 }
 0x287   : > { %1980 = vpow2.f32 %v1048_v28 }
 0x28d   : > { %v1981_v31 = vpop.eup %1980  ;;  %942 = vadd.xlane.f32.xlu2 %v941_v30 }
 0x28e   : > { %v1053_v32 = vsel %vm882_vm2, %v1981_v31, 0.0 }
 0x28f   : > { %1054 = vadd.xlane.f32.xlu0 %v1053_v32 }
 0x29a   : > { %v1092_v33 = vpop.permute.xlu1 %1091 }
 0x29b   : > { %v1097_v34 = vsel %vm955_vm3, %v1092_v33, 0 }
 0x29c   : > { %1106 = vmatpush.bf16.msra.mxu1 %v1097_v34 }
 0x2a3   : > { %1178 = vrot.lane.b32.xlu0 %v2279_v21, %s2059_s2  ;;  %s2554_s2 = sld [smem:[#allocation14_spill]] }
 0x2a5   : > { %1176 = vrot.lane.b32.xlu2 %v2279_v21, %s2060_s22 }
 0x2a9   : > { %s2555_s23 = scalar_lea.vmem %s2554_s2, %s2174_s29  ;;  %s2559_s2 = scalar_lea.vmem %s2516_s15, %s2174_s29 }
 0x2ad   : > { %1225 = vrot.lane.b32.xlu2 %v2313_v52, %s2060_s22 }
 0x2af   : > { %v940_v35 = vpop.xlane.xlu2 %939 }
 0x2b0   : > { %1982 = vrcp.f32 %v940_v35 }
 0x2b5   : > { %1292 = vrot.lane.b32.xlu2 %v2274_v16, %s2061_s27 }
 0x2b6   : > { %v1983_v36 = vpop.eup %1982 }
 0x2b7   : > { %v946_v38 = vmul.f32 %v1983_v36, %v1975_v11 }
 0x2b9   : > { %v950_v39 = vpack.c.bf16 %v946_v38, %v946_v38 }
 0x2bb   : > { %1877 = vmatmul.msk.bf16.vlgmr.msrb.gmra.mxu0 %vm882_vm2, %v950_v39 }
 0x2bc   : > { %1170 = vmatpush.bf16.xpose.msrb.mxu0 %v1161_v40 }
 0x2bd   : > { %1315 = vrot.lane.b32.xlu2 %v2279_v21, %s2061_s27  ;;  %s2556_s27 = scalar_lea.vmem %s2513_s12, %s2174_s29 }
 0x2bf   : > { %v1052_v41 = vpop.xlane.xlu2 %1051 }
 0x2c0   : > { %1984 = vrcp.f32 %v1052_v41 }
 0x2c5   : > { %1290 = vrot.lane.b32.xlu2 %v2274_v16, %s2062_s7 }
 0x2c6   : > { %v1985_v42 = vpop.eup %1984 }
 0x2c7   : > { %v1058_v43 = vmul.f32 %v1985_v42, %v1977_v19  ;;  %v1154_v46 = vpop.permute.xlu2 %1153 }
 0x2c9   : > { %v2354_v44 = vadd.f32 %v1058_v43, %v946_v38  ;;  %v1062_v45 = vpack.c.bf16 %v1058_v43, %v1058_v43 }
 0x2cb   : > { %1881 = vmatmul.msk.bf16.vlgmr.msra.gmra.mxu0 %vm882_vm2, %v1062_v45 }
 0x2cd   : > { %1313 = vrot.lane.b32.xlu2 %v2279_v21, %s2062_s7 }
 0x2d5   : > { %1246 = vrot.lane.b32.xlu2 %v2328_v5, %s2060_s22 }
 0x2db   : > { %1885 = vmatmul.msk.bf16.vlgmr.msrb.gmra.mxu0 %vm882_vm2, %v1154_v46 }
 0x300   : > { %v943_v16 = vpop.xlane.xlu2 %942 }
 0x301   : > { %1986 = vrcp.f32 %v943_v16 }
 0x302   : > { %v1055_v49 = vpop.xlane.xlu0 %1054 }
 0x303   : > { %1988 = vrcp.f32 %v1055_v49 }
 0x307   : > { %v1987_v50 = vpop.eup %1986 }
 0x308   : > { %v947_v51 = vmul.f32 %v1987_v50, %v1979_v29  ;;  %v1177_v53 = vpop.permute.xlu2 %1176 }
 0x309   : > { %v1989_v54 = vpop.eup %1988 }
 0x30a   : > { %v1059_v21 = vmul.f32 %v1989_v54, %v1981_v31  ;;  %v951_v55 = vpack.c.bf16 %v947_v51, %v947_v51 }
 0x30c   : > { %v2364_v56 = vadd.f32 %v1059_v21, %v947_v51  ;;  %1878 = vmatmul.msk.bf16.vlgmr.msrb.gmra.mxu1 %vm882_vm2, %v951_v55  ;;  %v1063_v1 = vpack.c.bf16 %v1059_v21, %v1059_v21 }
 0x310   : > { %v1226_v57 = vpop.permute.xlu2 %1225 }
 0x311   : > { %v1231_v59 = vsel %vm955_vm3, %v1226_v57, 0 }
 0x312   : > { %1240 = vmatpush.bf16.msrb.mxu2 %v1231_v59 }
 0x315   : > { %v1179_v60 = vpop.permute.xlu0 %1178 }
 0x316   : > { %v1184_v61 = vsel %vm882_vm2, %v1179_v60, 0 }
 0x317   : > { %1193 = vmatpush.bf16.xpose.msrb.mxu1 %v1184_v61 }
 0x318   : > { %v1293_v62 = vpop.permute.xlu2 %1292 }
 0x319   : > { %v1298_v2 = vsel %vm882_vm2, %v1293_v62, 0 }
 0x31c   : > { %1882 = vmatmul.msk.bf16.vlgmr.msra.gmra.mxu1 %vm882_vm2, %v1063_v1 }
 0x31f   : > { %1307 = vmatpush.bf16.xpose.msra.mxu1 %v1298_v2 }
 0x320   : > { %v1316_v6 = vpop.permute.xlu2 %1315 }
 0x321   : > { %v1321_v26 = vsel %vm882_vm2, %v1316_v6, 0 }
 0x328   : > { %v1291_v7 = vpop.permute.xlu2 %1290 }
 0x32c   : > { %1886 = vmatmul.msk.bf16.vlgmr.msrb.gmra.mxu1 %vm882_vm2, %v1177_v53 }
 0x330   : > { %v2374_v8 = vpop.permute.xlu2 %1313 }
 0x338   : > { %v968_v9 = vpop.f32.mrf.mxu0  ;;  %v1247_v10 = vpop.permute.xlu2 %1246 }
 0x339   : > { %v1252_v11 = vsel %vm955_vm3, %v1247_v10, 0 }
 0x33a   : > { %1261 = vmatpush.bf16.msrb.mxu3 %v1252_v11 }
 0x33c   : > { %1890 = vmatmul.msk.bf16.vlgmr.msra.gmra.mxu1 %vm882_vm2, %v1291_v7 }
 0x340   : > { %v970_v12 = vpop.f32.mrf.mxu0 }
 0x348   : > { %v1084_v13 = vpop.f32.mrf.mxu0 }
 0x350   : > { %v1086_v14 = vpop.f32.mrf.mxu0 }
 0x358   : > { %v1172_v15 = vpop.f32.mrf.mxu0 }
 0x359   : > { %v1173_v17 = vadd.f32 %v1172_v15, %v2302_v37  ;;  %v867_v15 = vld [vmem:[%s2196_s28 + $0x8] sm:$0xf] }
 0x35b   : > { %v1199_v18 = vsel %vm882_vm2, %v1173_v17, -inf }
 0x35c   : > { %1200 = vmax.xlane.f32.xlu0 %v1199_v18 }
 0x360   : > { %v1174_v19 = vpop.f32.mrf.mxu0 }
 0x389   : > { %v987_v20 = vpop.f32.mrf.mxu1 }
 0x38a   : > { %v991_v22 = vpack.c.bf16 %v987_v20, %v968_v9 }
 0x38c   : > { %1884 = vmatmul.msk.bf16.vlgmr.msra.gmra.mxu3 %vm882_vm2, %v991_v22 }
 0x391   : > { %v989_v23 = vpop.f32.mrf.mxu1 }
 0x399   : > { %v1108_v24 = vpop.f32.mrf.mxu1 }
 0x39a   : > { %v1112_v25 = vpack.c.bf16 %v1108_v24, %v1084_v13 }
 0x39c   : > { %1883 = vmatmul.msk.bf16.vlgmr.msra.gmra.mxu2 %vm882_vm2, %v1112_v25 }
 0x39d   : > { %1330 = vmatpush.bf16.xpose.msra.mxu2 %v1321_v26 }
 0x3a1   : > { %v1110_v27 = vpop.f32.mrf.mxu1 }
 0x3a9   : > { %v1195_v28 = vpop.f32.mrf.mxu1 }
 0x3aa   : > { %v1196_v29 = vadd.f32 %v1195_v28, %v2322_v58 }
 0x3ac   : > { %v1202_v30 = vsel %vm882_vm2, %v1196_v29, -inf }
 0x3ad   : > { %1203 = vmax.xlane.f32.xlu0 %v1202_v30 }
 0x3b1   : > { %v1197_v31 = vpop.f32.mrf.mxu1 }
 0x3b9   : > { %v1309_v32 = vpop.f32.mrf.mxu1 }
 0x3ba   : > { %v1310_v33 = vadd.f32 %v1309_v32, %v2302_v37 }
 0x3bc   : > { %v1336_v34 = vsel %vm882_vm2, %v1310_v33, -inf }
 0x3bd   : > { %1337 = vmax.xlane.f32.xlu0 %v1336_v34 }
 0x3c1   : > { %v1311_v35 = vpop.f32.mrf.mxu1 }
 0x3cf   : > { %v1201_v36 = vpop.xlane.xlu0 %1200 }
 0x3d0   : > { %v1205_v38 = vsub.f32 %v1173_v17, %v1201_v36  ;;  %v1272_v17 = vsel %vm955_vm3, %v867_v15, 0 }
 0x3d1   : > { %1281 = vmatpush.bf16.msra.mxu0 %v1272_v17 }
 0x3d2   : > { %v1207_v39 = vmul.f32 1.442695, %v1205_v38 }
 0x3d4   : > { %1990 = vpow2.f32 %v1207_v39 }
 0x3da   : > { %v1991_v40 = vpop.eup %1990 }
 0x3db   : > { %v1211_v41 = vsel %vm882_vm2, %v1991_v40, 0.0 }
 0x3dc   : > { %1212 = vadd.xlane.f32.xlu1 %v1211_v41  ;;  %v868_v41 = vld [vmem:[%s2196_s28 + $0xc] sm:$0xf] }
 0x40f   : > { %v1148_v42 = vpop.f32.mrf.mxu3 }
 0x417   : > { %v1150_v18 = vpop.f32.mrf.mxu3 }
 0x41f   : > { %v1128_v43 = vpop.f32.mrf.mxu2 }
 0x420   : > { %v2388_v45 = vadd.f32 %v1148_v42, %v1128_v43  ;;  %v1204_v46 = vpop.xlane.xlu0 %1203  ;;  %v1409_v42 = vsel %vm955_vm3, %v868_v41, 0 }
 0x421   : > { %v1206_v47 = vsub.f32 %v1196_v29, %v1204_v46  ;;  %1418 = vmatpush.bf16.msrb.mxu1 %v1409_v42 }
 0x423   : > { %v1209_v48 = vmul.f32 1.442695, %v1206_v47 }
 0x425   : > { %1992 = vpow2.f32 %v1209_v48  ;;  %v1967_v48 = vld [vmem:[%s2553_s19] ss:$0 sm:$0xff] }
 0x427   : > { %v1130_v10 = vpop.f32.mrf.mxu2 }
 0x42b   : > { %v1993_v37 = vpop.eup %1992 }
 0x42c   : > { %v1214_v16 = vsel %vm882_vm2, %v1993_v37, 0.0 }
 0x42d   : > { %1215 = vadd.xlane.f32.xlu1 %v1214_v16 }
 0x430   : > { %v1338_v49 = vpop.xlane.xlu0 %1337 }
 0x431   : > { %v1342_v50 = vsub.f32 %v1310_v33, %v1338_v49 }
 0x433   : > { %v1344_v51 = vmul.f32 1.442695, %v1342_v50  ;;  %v1151_v50 = vadd.f32 %v1150_v18, %v1130_v10  ;;  %v1934_v18 = vld [vmem:[%s2205_s3] sm:$0xff] }
 0x435   : > { %1994 = vpow2.f32 %v1344_v51 }
 0x43b   : > { %v1995_v53 = vpop.eup %1994 }
 0x43c   : > { %v1348_v54 = vsel %vm882_vm2, %v1995_v53, 0.0 }
 0x43d   : > { %1349 = vadd.xlane.f32.xlu2 %v1348_v54 }
 0x44f   : > { %v1213_v21 = vpop.xlane.xlu1 %1212 }
 0x450   : > { %1996 = vrcp.f32 %v1213_v21 }
 0x456   : > { %v1997_v55 = vpop.eup %1996 }
 0x457   : > { %v1219_v57 = vmul.f32 %v1997_v55, %v1991_v40 }
 0x459   : > { %v1221_v59 = vadd.f32 %v1219_v57, %v2354_v44  ;;  %v1223_v60 = vpack.c.bf16 %v1219_v57, %v1219_v57 }
 0x45b   : > { %1887 = vmatmul.msk.bf16.vlgmr.msrb.gmra.mxu2 %vm882_vm2, %v1223_v60 }
 0x46b   : > { %1891 = vmatmul.msk.bf16.vlgmr.msra.gmra.mxu2 %vm882_vm2, %v2374_v8 }
 0x4a0   : > { %v1216_v61 = vpop.xlane.xlu1 %1215 }
 0x4a1   : > { %1998 = vrcp.f32 %v1216_v61  ;;  %v2063_v61 = vmov 32.0  }
 0x4a7   : > { %v1999_v62 = vpop.eup %1998 }
 0x4a8   : > { %v1220_v63 = vmul.f32 %v1999_v62, %v1993_v37 }
 0x4aa   : > { %v1222_v0 = vadd.f32 %v1220_v63, %v2364_v56  ;;  %v1224_v1 = vpack.c.bf16 %v1220_v63, %v1220_v63 }
 0x4ac   : > { %1888 = vmatmul.msk.bf16.vlgmr.msrb.gmra.mxu3 %vm882_vm2, %v1224_v1 }
 0x4b0   : > { %v1350_v2 = vpop.xlane.xlu2 %1349 }
 0x4b1   : > { %2000 = vrcp.f32 %v1350_v2 }
 0x4b7   : > { %v2001_v6 = vpop.eup %2000 }
 0x4b8   : > { %v1356_v44 = vmul.f32 %v2001_v6, %v1995_v53 }
 0x4ba   : > { %v1358_v7 = vadd.f32 %v1356_v44, %v1221_v59  ;;  %v1360_v28 = vpack.c.bf16 %v1356_v44, %v1356_v44 }
 0x4bc   : > { %v1653_v9 = vmul.f32 0.25, %v1358_v7 }
 0x4be   : > { %1655 = vst.msk [vmem:[#allocation2] sm:$0xff] %vm882_vm2, %v1653_v9 }
 0x4de   : > { %v1242_v8 = vpop.f32.mrf.mxu2 }
 0x4e6   : > { %v1244_v11 = vpop.f32.mrf.mxu2 }
 0x4ee   : > { %v1332_v12 = vpop.f32.mrf.mxu2 }
 0x4ef   : > { %v1333_v13 = vadd.f32 %v1332_v12, %v2322_v58 }
 0x4f1   : > { %v1339_v56 = vsel %vm882_vm2, %v1333_v13, -inf }
 0x4f2   : > { %1340 = vmax.xlane.f32.xlu1 %v1339_v56  ;;  %v1935_v56 = vld [vmem:[%s2205_s3 + $0x8] sm:$0xff]  ;;  %s2558_s3 = sld [smem:[#allocation16_spill]] }
 0x4f3   : > { %1528 = vmatpush.bf16.msrb.mxu2 %v1935_v56 }
 0x4f6   : > { %v1334_v14 = vpop.f32.mrf.mxu2 }
 0x4f7   : > { %1529 = vmatpush.bf16.msrb.mxu2 %v1934_v18 }
 0x4f8   : > { %s1667_s28 = sshll.u32 %s2558_s3, 4  ;;  %s1668_s28 = int_to_ptr.hbm [resolvable:$true] %s1667_s28 }
 0x50b   : > { %1362 = vrot.lane.b32.xlu1 %v2313_v52, %s2062_s7 }
 0x52f   : > { %v1263_v19 = vpop.f32.mrf.mxu3 }
 0x530   : > { %v1267_v20 = vpack.c.bf16 %v1263_v19, %v1242_v8 }
 0x532   : > { %1889 = vmatmul.msk.bf16.vlgmr.msra.gmra.mxu0 %vm882_vm2, %v1267_v20 }
 0x537   : > { %v1265_v22 = vpop.f32.mrf.mxu3 }
 0x565   : > { %v1341_v23 = vpop.xlane.xlu1 %1340 }
 0x566   : > { %v1343_v24 = vsub.f32 %v1333_v13, %v1341_v23 }
 0x568   : > { %v1346_v58 = vmul.f32 1.442695, %v1343_v24 }
 0x56a   : > { %2002 = vpow2.f32 %v1346_v58 }
 0x570   : > { %v2003_v25 = vpop.eup %2002 }
 0x571   : > { %v1351_v26 = vsel %vm882_vm2, %v2003_v25, 0.0 }
 0x572   : > { %1352 = vadd.xlane.f32.xlu0 %v1351_v26 }
 0x57d   : > { %v1363_v27 = vpop.permute.xlu1 %1362 }
 0x57e   : > { %v1368_v52 = vsel %vm955_vm3, %v1363_v27, 0 }
 0x57f   : > { %1377 = vmatpush.bf16.msra.mxu3 %v1368_v52 }
 0x582   : > { %1892 = vmatmul.msk.bf16.vlgmr.msra.gmra.mxu3 %vm882_vm2, %v1360_v28 }
 0x586   : > { %1383 = vrot.lane.b32.xlu0 %v2328_v5, %s2062_s7  ;;  %s2064_s7 = smov [#allocation2]  }
 0x587   : > { %s1665_s24 = sshll.u32 %s2064_s7, 4  ;;  %s1666_s24 = int_to_ptr.vmem [resolvable:$true] %s1665_s24 }
 0x5af   : > { %v1283_v29 = vpop.f32.mrf.mxu0 }
 0x5b0   : > { %v1288_v30 = vadd.f32 %v1283_v29, %v2388_v45 }
 0x5b7   : > { %v1285_v43 = vpop.f32.mrf.mxu0 }
 0x5b8   : > { %v1289_v53 = vadd.f32 %v1285_v43, %v1151_v50 }
 0x5e5   : > { %v1353_v31 = vpop.xlane.xlu0 %1352 }
 0x5e6   : > { %2004 = vrcp.f32 %v1353_v31 }
 0x5e7   : > { %2006 = vrcp.f32 %v2063_v61 }
 0x5ec   : > { %v2005_v32 = vpop.eup %2004 }
 0x5ed   : > { %v1357_v33 = vmul.f32 %v2005_v32, %v2003_v25  ;;  %v2007_v62 = vpop.eup %2006 }
 0x5ee   : > { %v1444_v63 = vmul.f32 32.0, %v2007_v62  ;;  %vm1448_vm4 = vweird.f32 %v2007_v62 }
 0x5ef   : > { %v1359_v34 = vadd.f32 %v1357_v33, %v1222_v0  ;;  %v1361_v39 = vpack.c.bf16 %v1357_v33, %v1357_v33  ;;  %v1968_v33 = vld [vmem:[%s756_s20] ss:$0 sm:$0xff] }
 0x5f0   : > { %v1445_v0 = vsub.f32 1.0, %v1444_v63 }
 0x5f1   : > { %v1654_v35 = vmul.f32 0.25, %v1359_v34 }
 0x5f2   : > { %v1446_v1 = vmul.f32 %v2007_v62, %v1445_v0 }
 0x5f3   : > { %1656 = vst.msk [vmem:[#allocation2 + $0x8] sm:$0xff] %vm882_vm2, %v1654_v35 }
 0x5f8   : > { %v1384_v36 = vpop.permute.xlu0 %1383 }
 0x5f9   : > { %v1389_v38 = vsel %vm955_vm3, %v1384_v36, 0 }
 0x5fa   : > { %1398 = vmatpush.bf16.msrb.mxu0 %v1389_v38  ;;  %v1969_v38 = vld [vmem:[%s759_s9] ss:$0 sm:$0xff] }
 0x5fd   : > { %1893 = vmatmul.msk.bf16.vlgmr.msrb.gmra.mxu0 %vm882_vm2, %v1361_v39 }
 0x605   : > { %v1379_v5 = vpop.f32.mrf.mxu3 }
 0x60d   : > { %v1381_v40 = vpop.f32.mrf.mxu3 }
 0x67a   : > { %v1400_v45 = vpop.f32.mrf.mxu0 }
 0x67b   : > { %v1404_v46 = vpack.c.bf16 %v1400_v45, %v1379_v5  ;;  %v1939_v45 = vld [vmem:[%s2215_s17 + $0x18] sm:$0xff] }
 0x67c   : > { %1583 = vmatpush.bf16.msrb.mxu3 %v1939_v45 }
 0x67d   : > { %1894 = vmatmul.msk.bf16.vlgmr.msrb.gmra.mxu1 %vm882_vm2, %v1404_v46  ;;  %v1938_v46 = vld [vmem:[%s2215_s17 + $0x10] sm:$0xff] }
 0x680   : > { %1584 = vmatpush.bf16.msrb.mxu3 %v1938_v46 }
 0x682   : > { %v1402_v47 = vpop.f32.mrf.mxu0 }
 0x683   : > { %v1937_v47 = vld [vmem:[%s2215_s17 + $0x8] sm:$0xff] }
 0x684   : > { %1585 = vmatpush.bf16.msrb.mxu3 %v1937_v47 }
 0x6fa   : > { %v1420_v37 = vpop.f32.mrf.mxu1 }
 0x6fb   : > { %v1425_v16 = vadd.f32 %v1420_v37, %v1288_v30 }
 0x6fd   : > { %v1431_v49 = vadd.f32 %v1967_v48, %v1425_v16  ;;  %v1970_v16 = vld [vmem:[%s2555_s23] ss:$0 sm:$0xff] }
 0x6ff   : > { %v1433_v51 = vadd.f32 %v1431_v49, %v2253_v3  ;;  %v1447_v3 = vadd.f32 %v2007_v62, %v1446_v1 }
 0x701   : > { %v1437_v54 = vsel %vm807_vm1, %v1433_v51, 0.0  ;;  %v2427_v2 = vsel %vm1448_vm4, %v2007_v62, %v1447_v3 }
 0x702   : > { %1438 = vadd.xlane.f32.xlu1 %v1437_v54  ;;  %v1422_v21 = vpop.f32.mrf.mxu1 }
 0x703   : > { %v1426_v55 = vadd.f32 %v1422_v21, %v1289_v53 }
 0x705   : > { %v1432_v57 = vadd.f32 %v1967_v48, %v1426_v55  ;;  %v1936_v48 = vld [vmem:[%s2215_s17] sm:$0xff]  ;;  %s2557_s17 = sld [smem:[#allocation6_spill]] }
 0x706   : > { %1586 = vmatpush.bf16.msrb.mxu3 %v1936_v48  ;;  %v1971_v55 = vld [vmem:[%s2556_s27] ss:$0 sm:$0xff] }
 0x707   : > { %v1434_v59 = vadd.f32 %v1432_v57, %v2258_v4 }
 0x709   : > { %v1440_v60 = vsel %vm807_vm1, %v1434_v59, 0.0 }
 0x70a   : > { %1441 = vadd.xlane.f32.xlu0 %v1440_v60 }
 0x70b   : > { %p1944_p5 = scmp.eq.s32.totalorder %s2557_s17, 1 }
 0x70d   : > { %1941 = dma.vmem_to_hbm [thread:$0]  (%p1944_p5), %s1666_s24, 256, %s1668_s28, [#allocation3], %s2065_s21, %s2065_s21, %s2066_s5  }
 0x775   : > { %v1439_v6 = vpop.xlane.xlu1 %1438 }
 0x776   : > { %v1450_v44 = vmul.f32 %v2427_v2, %v1439_v6 }
 0x778   : > { %v1452_v7 = vsub.f32 %v1433_v51, %v1450_v44 }
 0x77a   : > { %v1454_v4 = vmul.f32 %v1452_v7, %v1452_v7 }
 0x77c   : > { %v1456_v9 = vsel %vm807_vm1, %v1454_v4, 0.0 }
 0x77d   : > { %1457 = vadd.xlane.f32.xlu2 %v1456_v9  ;;  %v1442_v10 = vpop.xlane.xlu0 %1441 }
 0x77e   : > { %v1451_v8 = vmul.f32 %v2427_v2, %v1442_v10 }
 0x780   : > { %v1453_v11 = vsub.f32 %v1434_v59, %v1451_v8 }
 0x782   : > { %v1455_v12 = vmul.f32 %v1453_v11, %v1453_v11 }
 0x784   : > { %v1459_v13 = vsel %vm807_vm1, %v1455_v12, 0.0 }
 0x785   : > { %1460 = vadd.xlane.f32.xlu2 %v1459_v13 }
 0x7f0   : > { %v1458_v14 = vpop.xlane.xlu2 %1457 }
 0x7f1   : > { %v1462_v15 = vmul.f32 %v1458_v14, %v2427_v2 }
 0x7f3   : > { %v1464_v17 = vadd.f32 1e-05, %v1462_v15 }
 0x7f5   : > { %2008 = vrsqrt.f32 %v1464_v17  ;;  %vm1472_vm6 = vweird.f32 %v1464_v17 }
 0x7f8   : > { %v1461_v19 = vpop.xlane.xlu2 %1460 }
 0x7f9   : > { %v1463_v20 = vmul.f32 %v1461_v19, %v2427_v2 }
 0x7fb   : > { %v2009_v22 = vpop.eup %2008  ;;  %v1465_v23 = vadd.f32 1e-05, %v1463_v20 }
 0x7fc   : > { %v1467_v24 = vmul.f32 %v2009_v22, %v1464_v17  ;;  %vm1473_vm5 = vweird.f32 %v2009_v22 }
 0x7fd   : > { %2010 = vrsqrt.f32 %v1465_v23  ;;  %vm1474_vm7 = vmor %vm1472_vm6, %vm1473_vm5  ;;  %vm1482_vm9 = vweird.f32 %v1465_v23 }
 0x7fe   : > { %v1468_v58 = vmul.f32 %v2009_v22, %v1467_v24 }
 0x800   : > { %v1469_v25 = vmul.f32 0.5, %v1468_v58 }
 0x802   : > { %v1470_v26 = vsub.f32 1.5, %v1469_v25 }
 0x803   : > { %v2011_v27 = vpop.eup %2010 }
 0x804   : > { %v1471_v52 = vmul.f32 %v2009_v22, %v1470_v26  ;;  %v1477_v28 = vmul.f32 %v2011_v27, %v1465_v23  ;;  %vm1483_vm8 = vweird.f32 %v2011_v27 }
 0x805   : > { %vm1484_vm10 = vmor %vm1482_vm9, %vm1483_vm8 }
 0x806   : > { %v1478_v29 = vmul.f32 %v2011_v27, %v1477_v28  ;;  %v1475_v30 = vsel %vm1474_vm7, %v2009_v22, %v1471_v52  ;;  %v1973_v28 = vld [vmem:[%s765_s25] ss:$0 sm:$0xff] }
 0x807   : > { %v1486_v34 = vmul.f32 %v1475_v30, %v1452_v7 }
 0x808   : > { %v1479_v31 = vmul.f32 0.5, %v1478_v29 }
 0x809   : > { %v1491_v39 = vmul.f32 %v1968_v33, %v1486_v34 }
 0x80a   : > { %v1480_v32 = vsub.f32 1.5, %v1479_v31 }
 0x80b   : > { %v1496_v41 = vadd.f32 %v1969_v38, %v1491_v39 }
 0x80c   : > { %v1481_v35 = vmul.f32 %v2011_v27, %v1480_v32 }
 0x80e   : > { %v1485_v36 = vsel %vm1484_vm10, %v2011_v27, %v1481_v35  ;;  %v1972_v27 = vld [vmem:[%s2559_s2] ss:$0 sm:$0xff] }
 0x80f   : > { %v1487_v5 = vmul.f32 %v1485_v36, %v1453_v11 }
 0x811   : > { %v1492_v40 = vmul.f32 %v1968_v33, %v1487_v5 }
 0x813   : > { %v1497_v42 = vadd.f32 %v1969_v38, %v1492_v40 }
 0x815   : > { %v1498_v43 = vpack.c.bf16 %v1497_v42, %v1496_v41 }
 0x817   : > { %1903 = vmatmul.msk.bf16.vlgmr.msrb.gmra.mxu2 %vm807_vm1, %v1498_v43 }
 0x89a   : > { %v1531_v37 = vpop.f32.mrf.mxu2 }
 0x89b   : > { %v1532_v49 = vadd.f32 %v1970_v16, %v1531_v37 }
 0x89d   : > { %v1536_v53 = vmax.f32 %v1532_v49, 0.0 }
 0x8a2   : > { %v1533_v50 = vpop.f32.mrf.mxu2 }
 0x8a3   : > { %v1534_v51 = vadd.f32 %v1970_v16, %v1533_v50 }
 0x8a5   : > { %v1537_v54 = vmax.f32 %v1534_v51, 0.0 }
 0x8a7   : > { %v1538_v21 = vpack.c.bf16 %v1537_v54, %v1536_v53 }
 0x8a9   : > { %1920 = vmatmul.msk.bf16.vlgmr.msrb.gmra.mxu3 %vm1575_vm11, %v1538_v21 }
 0x92c   : > { %v1588_v57 = vpop.f32.mrf.mxu3 }
 0x92d   : > { %v1589_v59 = vadd.f32 %v1971_v55, %v1588_v57 }
 0x92f   : > { %v1593_v60 = vadd.f32 %v1589_v59, %v1496_v41 }
 0x931   : > { %v1597_v61 = vsel %vm807_vm1, %v1593_v60, 0.0 }
 0x932   : > { %1598 = vadd.xlane.f32.xlu2 %v1597_v61 }
 0x934   : > { %v1590_v62 = vpop.f32.mrf.mxu3 }
 0x935   : > { %v1591_v63 = vadd.f32 %v1971_v55, %v1590_v62 }
 0x937   : > { %v1594_v0 = vadd.f32 %v1591_v63, %v1497_v42 }
 0x939   : > { %v1600_v1 = vsel %vm807_vm1, %v1594_v0, 0.0 }
 0x93a   : > { %1601 = vadd.xlane.f32.xlu2 %v1600_v1 }
 0x9a5   : > { %v1599_v3 = vpop.xlane.xlu2 %1598 }
 0x9a6   : > { %v1603_v6 = vmul.f32 %v1599_v3, %v2427_v2 }
 0x9a8   : > { %v1605_v44 = vsub.f32 %v1593_v60, %v1603_v6 }
 0x9aa   : > { %v1607_v7 = vmul.f32 %v1605_v44, %v1605_v44 }
 0x9ac   : > { %v1609_v4 = vsel %vm807_vm1, %v1607_v7, 0.0 }
 0x9ad   : > { %1610 = vadd.xlane.f32.xlu1 %v1609_v4  ;;  %v1602_v9 = vpop.xlane.xlu2 %1601 }
 0x9ae   : > { %v1604_v10 = vmul.f32 %v1602_v9, %v2427_v2 }
 0x9b0   : > { %v1606_v8 = vsub.f32 %v1594_v0, %v1604_v10 }
 0x9b2   : > { %v1608_v11 = vmul.f32 %v1606_v8, %v1606_v8 }
 0x9b4   : > { %v1612_v12 = vsel %vm807_vm1, %v1608_v11, 0.0 }
 0x9b5   : > { %1613 = vadd.xlane.f32.xlu2 %v1612_v12 }
 0xa20   : > { %v1611_v13 = vpop.xlane.xlu1 %1610 }
 0xa21   : > { %v1615_v56 = vmul.f32 %v1611_v13, %v2427_v2 }
 0xa23   : > { %v1617_v14 = vadd.f32 1e-05, %v1615_v56 }
 0xa25   : > { %2012 = vrsqrt.f32 %v1617_v14  ;;  %vm1625_vm13 = vweird.f32 %v1617_v14 }
 0xa28   : > { %v1614_v15 = vpop.xlane.xlu2 %1613 }
 0xa29   : > { %v1616_v17 = vmul.f32 %v1614_v15, %v2427_v2 }
 0xa2b   : > { %v2013_v18 = vpop.eup %2012  ;;  %v1618_v19 = vadd.f32 1e-05, %v1616_v17 }
 0xa2c   : > { %v1620_v20 = vmul.f32 %v2013_v18, %v1617_v14  ;;  %vm1626_vm12 = vweird.f32 %v2013_v18 }
 0xa2d   : > { %2014 = vrsqrt.f32 %v1618_v19  ;;  %vm1627_vm14 = vmor %vm1625_vm13, %vm1626_vm12  ;;  %vm1635_vm0 = vweird.f32 %v1618_v19 }
 0xa2e   : > { %v1621_v22 = vmul.f32 %v2013_v18, %v1620_v20 }
 0xa30   : > { %v1622_v23 = vmul.f32 0.5, %v1621_v22 }
 0xa32   : > { %v1623_v24 = vsub.f32 1.5, %v1622_v23 }
 0xa33   : > { %v2015_v58 = vpop.eup %2014 }
 0xa34   : > { %v1624_v25 = vmul.f32 %v2013_v18, %v1623_v24  ;;  %v1630_v26 = vmul.f32 %v2015_v58, %v1618_v19  ;;  %vm1636_vm15 = vweird.f32 %v2015_v58 }
 0xa35   : > { %vm1637_vm2 = vmor %vm1635_vm0, %vm1636_vm15 }
 0xa36   : > { %v1628_v2 = vsel %vm1627_vm14, %v2013_v18, %v1624_v25  ;;  %v1631_v52 = vmul.f32 %v2015_v58, %v1630_v26 }
 0xa37   : > { %v1639_v29 = vmul.f32 %v1628_v2, %v1605_v44 }
 0xa38   : > { %v1632_v30 = vmul.f32 0.5, %v1631_v52 }
 0xa39   : > { %v1644_v31 = vmul.f32 %v1972_v27, %v1639_v29 }
 0xa3a   : > { %v1633_v32 = vsub.f32 1.5, %v1632_v30 }
 0xa3b   : > { %v1649_v33 = vadd.f32 %v1973_v28, %v1644_v31 }
 0xa3c   : > { %v1634_v34 = vmul.f32 %v2015_v58, %v1633_v32 }
 0xa3d   : > { %1651 = vst.msk [vmem:[%s2548_s26] sm:$0xff] %vm807_vm1, %v1649_v33 }
 0xa3e   : > { %v1638_v35 = vsel %vm1637_vm2, %v2015_v58, %v1634_v34 }
 0xa3f   : > { %v1640_v36 = vmul.f32 %v1638_v35, %v1606_v8 }
 0xa41   : > { %v1645_v38 = vmul.f32 %v1972_v27, %v1640_v36 }
 0xa43   : > { %v1650_v39 = vadd.f32 %v1973_v28, %v1645_v38 }
 0xa45   : > { %1652 = vst.msk [vmem:[%s2548_s26 + $0x8] sm:$0xff] %vm807_vm1, %v1650_v39 }
 0xa46   : > { %2049 = dma.done.wait (%p1944_p5), [#allocation3], 256  }
 0xa47   : > { %2051 = vsyncadd (%p1944_p5), [#allocation3], 4294967040 }
 0xa48 PF: > { %s2560_s7 = sld [smem:[#allocation5_spill]] }
 0xa4e   : > { %s30_s27 = sadd.s32 1, %s2560_s7  }
 0xa4f   : > { %p27_p6 = scmp.ge.s32.totalorder %s30_s27, 4  }
 0xa51   :  { %29 = sbr.rel (!%p27_p6) target bundleno = 12 (0xc), region = 166 }
 0xa56   :  { %1687 = vsyncpa [#allocation3], 1 }
 0xa57   :  { %1689 = vsyncpa [#allocation3 + $0x1], 1 }

</bundles_post_ra>
